<compile_context>
chip_gen: v7x
topology: tpu7x:2x2x1
jax: 0.10.0
libtpu: 0.0.40
codegen_flags: <defaults>
</compile_context>

<pallas_src>
import functools

import jax
import jax.numpy as jnp
from jax.experimental import pallas as pl
from jax.experimental.pallas import tpu as pltpu

# TODO(synk): the real news_encoder (BERT-based) is an external module passed into __init__;
#             it is treated as identity here and inputs are assumed to be already-encoded news vectors.
# TODO(synk): no padding/length mask over the news axis (matches the original module); variable-length
#             news sets would need scores masked to -inf before both softmaxes.


def _news_set_encoder_kernel(x_ref, wqkv_ref, wa_ref, ba_ref, qv_ref, o_ref, attn_ref, *,
                             news_per_set, head_num, head_dim, user_dim):
    """One grid step processes a block of `bt` batch elements.

    x_ref    : (bt*N, D)          flattened block of pre-encoded news vectors
    wqkv_ref : (D, 3*user_dim)    fused [Wq | Wk | Wv] projection (resident across steps)
    wa_ref   : (out_dim, K)       additive-attention projection (zero rows in the lane pad)
    ba_ref/qv_ref : (1, K)        additive-attention bias / query row
    o_ref    : (bt, out_dim)      pooled user vectors, out_dim = user_dim padded to 128 lanes
    attn_ref : (bt, N, out_dim)   VMEM scratch staging all head outputs (lane-sliced per head)
    """
    N = news_per_set
    rows, _ = x_ref.shape
    bt = rows // N
    out_dim = o_ref.shape[-1]
    key_dim = wa_ref.shape[-1]
    cdt = x_ref.dtype

    # Fused QKV projection: one lane-dense MXU matmul, f32 accumulation; cast back to the
    # compute dtype so the downstream attention/Wa matmuls run at bf16 MXU rate when enabled.
    qkv = jnp.dot(x_ref[...], wqkv_ref[...], preferred_element_type=jnp.float32).astype(cdt)
    # NOTE: splitting rows -> (bt, N) is free when N is a multiple of 8 (true in the demo);
    #       otherwise it costs one relayout per step.
    qkv3 = qkv.reshape(bt, N, 3 * user_dim)

    # Keep the pad lanes of the scratch deterministic (zero) every step: they feed the padded
    # Wa matmul (zero weight rows) and the pad lanes of the pooled output.
    pad = out_dim - user_dim
    if pad > 0:
        attn_ref[:, :, user_dim:] = jnp.zeros((bt, N, pad), attn_ref.dtype)

    # Per-head self-attention over the news axis (NRMS style: no 1/sqrt(head_dim) scaling).
    # Each head's output is written into its lane slice of the single attn_out scratch, so only
    # one head's temporaries are live at a time.
    for h in range(head_num):                       # static loop; per-head work is batched over bt
        lo = h * head_dim
        qh = qkv3[:, :, lo:lo + head_dim]                                   # (bt, N, Dh)
        kh = qkv3[:, :, user_dim + lo:user_dim + lo + head_dim]
        vh = qkv3[:, :, 2 * user_dim + lo:2 * user_dim + lo + head_dim]

        s = jnp.einsum('bnd,bmd->bnm', qh, kh, preferred_element_type=jnp.float32)
        s = s - jnp.max(s, axis=-1, keepdims=True)
        p = jnp.exp(s)
        p = p * pl.reciprocal(jnp.sum(p, axis=-1, keepdims=True), approx=True)
        oh = jnp.einsum('bnm,bmd->bnd', p.astype(cdt), vh,
                        preferred_element_type=jnp.float32)                 # (bt, N, Dh)
        attn_ref[:, :, lo:lo + head_dim] = oh.astype(attn_ref.dtype)

    attn = attn_ref[...]                                                    # (bt, N, out_dim)

    # Additive ("linear") attention pooling: ONE lane-dense Wa matmul over all heads at once.
    ta = jnp.dot(attn.reshape(bt * N, out_dim), wa_ref[...],
                 preferred_element_type=jnp.float32)                        # (bt*N, K)
    t = jnp.tanh(ta + ba_ref[...])                                          # f32 epilogue (v5e-safe)
    sc = jnp.sum(t.reshape(bt, N, key_dim) * qv_ref[...], axis=-1)          # (bt, N): news axis on lanes
    sc = sc - jnp.max(sc, axis=-1, keepdims=True)
    a = jnp.exp(sc)
    a = a * pl.reciprocal(jnp.sum(a, axis=-1, keepdims=True), approx=True)  # softmax over news

    # Pooled user vector: broadcast-mul + sublane reduce over the news axis; lane-dense store.
    o_ref[...] = jnp.sum(a[:, :, None] * attn.astype(jnp.float32), axis=1)


def _vmem_bytes_estimate(bt, N, D, user_dim, key_dim, out_dim, itemsize):
    """Rough per-step VMEM footprint used to size batch_tile against the budget."""
    rows = bt * N
    est = 2 * rows * D * itemsize                       # double-buffered x block
    est += 2 * bt * out_dim * 4                         # double-buffered f32 output block
    est += rows * out_dim * itemsize                    # attn_out scratch
    est += rows * 3 * user_dim * (4 + itemsize)         # qkv (f32 accumulate + compute-dtype copy)
    est += 2 * bt * N * N * 4                           # per-head scores + probs (f32)
    est += 2 * rows * key_dim * 4                       # ta / tanh temporaries
    est += rows * out_dim * 4                           # pooled broadcast temporary
    est += 2 * (D * 3 * user_dim + out_dim * key_dim + 2 * key_dim) * itemsize  # weights (2x buffered)
    return est


def news_set_encoder(x, params, *, head_num, head_dim, batch_tile=None,
                     compute_dtype=jnp.float32):
    B, N, D = x.shape
    user_dim = head_num * head_dim
    key_dim = params["wa"].shape[1]
    out_dim = pl.cdiv(user_dim, 128) * 128              # lane-dense output / scratch width

    # Fuse QKV weights host-side; pad Wa with zero rows to the lane-padded width so the Wa
    # matmul runs over a 128-multiple contraction depth with no masked loads.
    wqkv = jnp.concatenate([params["wq"], params["wk"], params["wv"]], axis=1).astype(compute_dtype)
    wa = jnp.pad(params["wa"], ((0, out_dim - user_dim), (0, 0))).astype(compute_dtype)
    ba = params["ba"].reshape(1, key_dim).astype(jnp.float32)
    qv = params["qv"].reshape(1, key_dim).astype(jnp.float32)
    x_c = x.astype(compute_dtype)

    # VMEM budget from the actual chip: ~48 MiB on v7x (64 MiB physical), ~96 MiB on v5e/v6e.
    try:
        phys_vmem = int(pltpu.get_tpu_info().vmem_capacity_bytes)
    except Exception:
        phys_vmem = 64 * 1024 * 1024                    # conservative (v7x) fallback
    vmem_limit = max(32 * 1024 * 1024, min(phys_vmem * 3 // 4, 112 * 1024 * 1024))

    itemsize = jnp.dtype(compute_dtype).itemsize

    bt = batch_tile
    if bt is None:
        # Target ~1024 QKV-matmul rows per step (multiple of the 256-wide v6e/v7x MXU, 128 on
        # v5e), shrink against the VMEM budget, and keep >=2 grid blocks for v7x megacore.
        bt = max(1, min(B, pl.cdiv(1024, N)))
        while bt > 8 and _vmem_bytes_estimate(bt, N, D, user_dim, key_dim, out_dim,
                                              itemsize) > 0.6 * vmem_limit:
            bt = max(8, bt // 2)
        if bt >= B and B > 1:
            bt = pl.cdiv(B, 2)
    # Layout constraint: the (bt*N, D) input block and the (bt, out_dim) output block need
    # their sublane dim divisible by 8 unless they span the full (padded) array.
    if bt >= 8:
        bt = (bt // 8) * 8
    elif B > 8:
        bt = 8
    else:
        bt = B                                          # single block covering the whole tiny batch

    num_blocks = pl.cdiv(B, bt)
    B_pad = num_blocks * bt
    if B_pad != B:
        x_c = jnp.pad(x_c, ((0, B_pad - B), (0, 0), (0, 0)))
    x2 = x_c.reshape(B_pad * N, D)                      # lane-dense 2D slab: clean rectangular DMA

    kernel = functools.partial(_news_set_encoder_kernel, news_per_set=N,
                               head_num=head_num, head_dim=head_dim, user_dim=user_dim)

    out = pl.pallas_call(
        kernel,
        out_shape=jax.ShapeDtypeStruct((B_pad, out_dim), jnp.float32),
        grid=(num_blocks,),
        in_specs=[
            pl.BlockSpec((bt * N, D), lambda b: (b, 0)),            # x: only per-step DMA traffic
            # TODO(synk): at real NRMS sizes (D~768, user_dim~400) mark the resident weights with
            #             pipeline_mode=pl.Buffered(1) so they are not double-buffered (v7x VMEM).
            pl.BlockSpec((D, 3 * user_dim), lambda b: (0, 0)),      # fused Wqkv (resident)
            pl.BlockSpec((out_dim, key_dim), lambda b: (0, 0)),     # Wa (zero-padded rows, resident)
            pl.BlockSpec((1, key_dim), lambda b: (0, 0)),           # ba
            pl.BlockSpec((1, key_dim), lambda b: (0, 0)),           # additive-attention query row
        ],
        out_specs=pl.BlockSpec((bt, out_dim), lambda b: (b, 0)),
        scratch_shapes=[pltpu.VMEM((bt, N, out_dim), compute_dtype)],
        compiler_params=pltpu.CompilerParams(
            # parallel batch-block axis -> shards across both TensorCores on v7x (num_blocks >= 2)
            dimension_semantics=("parallel",),
            vmem_limit_bytes=vmem_limit,
        ),
    )(x2, wqkv, wa, ba, qv)

    return out[:B, :user_dim]


def _reference(x, p, head_num, head_dim):
    """Pure-JAX reference of the same forward pass."""
    B, N, _ = x.shape
    q = (x @ p["wq"]).reshape(B, N, head_num, head_dim)
    k = (x @ p["wk"]).reshape(B, N, head_num, head_dim)
    v = (x @ p["wv"]).reshape(B, N, head_num, head_dim)
    s = jnp.einsum("bnhd,bmhd->bhnm", q, k)
    a = jax.nn.softmax(s, axis=-1)
    o = jnp.einsum("bhnm,bmhd->bnhd", a, v).reshape(B, N, head_num * head_dim)
    t = jnp.tanh(o @ p["wa"] + p["ba"])
    sc = (t @ p["qv"])[..., 0]
    al = jax.nn.softmax(sc, axis=-1)
    return jnp.einsum("bn,bnd->bd", al, o)


if __name__ == "__main__":
    # Small, self-consistent shapes; auto batch_tile picks bt=8 -> 2 grid blocks here.
    B, N = 16, 8           # batch, number of news per set
    news_dim = 32          # input_dim of SelfAttn
    head_num, head_dim = 4, 8
    user_dim = head_num * head_dim   # output_dim of LinearAttn == H*Dh
    key_dim = 16

    key = jax.random.PRNGKey(0)
    k_x, k_q, k_k, k_v, k_a, k_b, k_qv = jax.random.split(key, 7)

    x = jax.random.normal(k_x, (B, N, news_dim), dtype=jnp.float32)
    params = {
        "wq": 0.1 * jax.random.normal(k_q, (news_dim, user_dim), dtype=jnp.float32),
        "wk": 0.1 * jax.random.normal(k_k, (news_dim, user_dim), dtype=jnp.float32),
        "wv": 0.1 * jax.random.normal(k_v, (news_dim, user_dim), dtype=jnp.float32),
        "wa": 0.1 * jax.random.normal(k_a, (user_dim, key_dim), dtype=jnp.float32),
        "ba": 0.1 * jax.random.normal(k_b, (1, key_dim), dtype=jnp.float32),
        "qv": 0.1 * jax.random.normal(k_qv, (key_dim, 1), dtype=jnp.float32),
    }

    out = news_set_encoder(x, params, head_num=head_num, head_dim=head_dim)
    out = jax.block_until_ready(out)

    ref = _reference(x, params, head_num, head_dim)
    assert out.shape == (B, user_dim), out.shape
    # tolerance accounts for the approx (EUP) reciprocals in the two softmax normalizers
    assert jnp.allclose(out, ref, rtol=5e-3, atol=5e-4), "mismatch vs reference"

    print("KERNEL_OK")
</pallas_src>

<mosaic_0001>
module attributes {stable_mosaic.version = 11 : i64} {
  func.func @_news_set_encoder_kernel(%arg0: i32, %arg1: memref<64x32xf32, #tpu.memory_space<vmem>>, %arg2: memref<32x96xf32, #tpu.memory_space<vmem>>, %arg3: memref<128x16xf32, #tpu.memory_space<vmem>>, %arg4: memref<1x16xf32, #tpu.memory_space<vmem>>, %arg5: memref<1x16xf32, #tpu.memory_space<vmem>>, %arg6: memref<8x128xf32, #tpu.memory_space<vmem>>, %arg7: memref<8x8x128xf32, #tpu.memory_space<vmem>>) attributes {dimension_semantics = [#tpu.dimension_semantics<parallel>], iteration_bounds = array<i64: 2>, scalar_prefetch = 0 : i64, scratch_operands = 1 : i64, tpu.core_type = #tpu.core_type<tc>, window_params = [{transform_indices = @transform_0, window_bounds = array<i64: 64, 32>}, {pipeline_mode = #tpu.pipeline_mode<synchronous>, transform_indices = @transform_1, window_bounds = array<i64: 32, 96>}, {pipeline_mode = #tpu.pipeline_mode<synchronous>, transform_indices = @transform_2, window_bounds = array<i64: 128, 16>}, {pipeline_mode = #tpu.pipeline_mode<synchronous>, transform_indices = @transform_3, window_bounds = array<i64: 1, 16>}, {pipeline_mode = #tpu.pipeline_mode<synchronous>, transform_indices = @transform_4, window_bounds = array<i64: 1, 16>}, {transform_indices = @transform_5, window_bounds = array<i64: 8, 128>}]} {
    %c0 = arith.constant 0 : index
    %c0_0 = arith.constant 0 : index
    %0 = vector.load %arg1[%c0, %c0_0] : memref<64x32xf32, #tpu.memory_space<vmem>>, vector<64x32xf32>
    %c0_1 = arith.constant 0 : index
    %c0_2 = arith.constant 0 : index
    %1 = vector.load %arg2[%c0_1, %c0_2] : memref<32x96xf32, #tpu.memory_space<vmem>>, vector<32x96xf32>
    %cst = arith.constant dense<0.000000e+00> : vector<64x96xf32>
    %2 = tpu.matmul %0, %1, %cst {dimension_numbers = #tpu.dot_dimension_numbers<[1], [0], [0], [1], [0, 0, 1, 1], [], []>} : vector<64x32xf32>, vector<32x96xf32>, vector<64x96xf32> -> vector<64x96xf32>
    %3 = vector.shape_cast %2 : vector<64x96xf32> to vector<8x8x96xf32>
    %cst_3 = arith.constant 0.000000e+00 : f32
    %4 = vector.broadcast %cst_3 : f32 to vector<8x8x96xf32>
    %c0_4 = arith.constant 0 : index
    %c0_5 = arith.constant 0 : index
    %c32 = arith.constant 32 : index
    %5 = vector.load %arg7[%c0_4, %c0_5, %c32] : memref<8x8x128xf32, #tpu.memory_space<vmem>>, vector<8x8x96xf32>
    tpu.vector_store %arg7[%c0_4, %c0_5, %c32], %4 {strides = array<i32>} : memref<8x8x128xf32, #tpu.memory_space<vmem>>, vector<8x8x96xf32>,
    %6 = vector.extract_strided_slice %3 {offsets = [0, 0, 0], sizes = [8, 8, 8], strides = [1, 1, 1]} : vector<8x8x96xf32> to vector<8x8x8xf32>
    %7 = vector.extract_strided_slice %3 {offsets = [0, 0, 32], sizes = [8, 8, 8], strides = [1, 1, 1]} : vector<8x8x96xf32> to vector<8x8x8xf32>
    %8 = vector.extract_strided_slice %3 {offsets = [0, 0, 64], sizes = [8, 8, 8], strides = [1, 1, 1]} : vector<8x8x96xf32> to vector<8x8x8xf32>
    "tpu.trace_start"() <{level = 10 : i32, message = "bnd,bmd->bnm"}> : () -> ()
    %cst_6 = arith.constant dense<0.000000e+00> : vector<8x8x8xf32>
    %9 = tpu.matmul %6, %7, %cst_6 {dimension_numbers = #tpu.dot_dimension_numbers<[2], [2], [1], [1], [0, 0, 0, 1, 1, 1], [0], [0]>} : vector<8x8x8xf32>, vector<8x8x8xf32>, vector<8x8x8xf32> -> vector<8x8x8xf32>
    "tpu.trace_stop"() : () -> ()
    %cst_7 = arith.constant dense<0xFF800000> : vector<8x8xf32>
    %10 = vector.multi_reduction <maximumf>, %9, %cst_7 [2] : vector<8x8x8xf32> to vector<8x8xf32>
    %11 = vector.shape_cast %10 : vector<8x8xf32> to vector<8x8x1xf32>
    %12 = vector.broadcast %11 : vector<8x8x1xf32> to vector<8x8x8xf32>
    %13 = arith.subf %9, %12 : vector<8x8x8xf32>
    %14 = math.exp %13 : vector<8x8x8xf32>
    %cst_8 = arith.constant dense<0.000000e+00> : vector<8x8xf32>
    %15 = vector.multi_reduction <add>, %14, %cst_8 [2] : vector<8x8x8xf32> to vector<8x8xf32>
    %16 = vector.shape_cast %15 : vector<8x8xf32> to vector<8x8x1xf32>
    %17 = tpu.reciprocal %16 {approx = true} : vector<8x8x1xf32> -> vector<8x8x1xf32>
    %18 = vector.broadcast %17 : vector<8x8x1xf32> to vector<8x8x8xf32>
    %19 = arith.mulf %14, %18 : vector<8x8x8xf32>
    "tpu.trace_start"() <{level = 10 : i32, message = "bnm,bmd->bnd"}> : () -> ()
    %cst_9 = arith.constant dense<0.000000e+00> : vector<8x8x8xf32>
    %20 = tpu.matmul %19, %8, %cst_9 {dimension_numbers = #tpu.dot_dimension_numbers<[2], [1], [1], [2], [0, 0, 0, 1, 1, 2], [0], [0]>} : vector<8x8x8xf32>, vector<8x8x8xf32>, vector<8x8x8xf32> -> vector<8x8x8xf32>
    "tpu.trace_stop"() : () -> ()
    %c0_10 = arith.constant 0 : index
    %c0_11 = arith.constant 0 : index
    %c0_12 = arith.constant 0 : index
    %21 = vector.load %arg7[%c0_10, %c0_11, %c0_12] : memref<8x8x128xf32, #tpu.memory_space<vmem>>, vector<8x8x8xf32>
    tpu.vector_store %arg7[%c0_10, %c0_11, %c0_12], %20 {strides = array<i32>} : memref<8x8x128xf32, #tpu.memory_space<vmem>>, vector<8x8x8xf32>,
    %22 = vector.extract_strided_slice %3 {offsets = [0, 0, 8], sizes = [8, 8, 8], strides = [1, 1, 1]} : vector<8x8x96xf32> to vector<8x8x8xf32>
    %23 = vector.extract_strided_slice %3 {offsets = [0, 0, 40], sizes = [8, 8, 8], strides = [1, 1, 1]} : vector<8x8x96xf32> to vector<8x8x8xf32>
    %24 = vector.extract_strided_slice %3 {offsets = [0, 0, 72], sizes = [8, 8, 8], strides = [1, 1, 1]} : vector<8x8x96xf32> to vector<8x8x8xf32>
    "tpu.trace_start"() <{level = 10 : i32, message = "bnd,bmd->bnm"}> : () -> ()
    %cst_13 = arith.constant dense<0.000000e+00> : vector<8x8x8xf32>
    %25 = tpu.matmul %22, %23, %cst_13 {dimension_numbers = #tpu.dot_dimension_numbers<[2], [2], [1], [1], [0, 0, 0, 1, 1, 1], [0], [0]>} : vector<8x8x8xf32>, vector<8x8x8xf32>, vector<8x8x8xf32> -> vector<8x8x8xf32>
    "tpu.trace_stop"() : () -> ()
    %cst_14 = arith.constant dense<0xFF800000> : vector<8x8xf32>
    %26 = vector.multi_reduction <maximumf>, %25, %cst_14 [2] : vector<8x8x8xf32> to vector<8x8xf32>
    %27 = vector.shape_cast %26 : vector<8x8xf32> to vector<8x8x1xf32>
    %28 = vector.broadcast %27 : vector<8x8x1xf32> to vector<8x8x8xf32>
    %29 = arith.subf %25, %28 : vector<8x8x8xf32>
    %30 = math.exp %29 : vector<8x8x8xf32>
    %cst_15 = arith.constant dense<0.000000e+00> : vector<8x8xf32>
    %31 = vector.multi_reduction <add>, %30, %cst_15 [2] : vector<8x8x8xf32> to vector<8x8xf32>
    %32 = vector.shape_cast %31 : vector<8x8xf32> to vector<8x8x1xf32>
    %33 = tpu.reciprocal %32 {approx = true} : vector<8x8x1xf32> -> vector<8x8x1xf32>
    %34 = vector.broadcast %33 : vector<8x8x1xf32> to vector<8x8x8xf32>
    %35 = arith.mulf %30, %34 : vector<8x8x8xf32>
    "tpu.trace_start"() <{level = 10 : i32, message = "bnm,bmd->bnd"}> : () -> ()
    %cst_16 = arith.constant dense<0.000000e+00> : vector<8x8x8xf32>
    %36 = tpu.matmul %35, %24, %cst_16 {dimension_numbers = #tpu.dot_dimension_numbers<[2], [1], [1], [2], [0, 0, 0, 1, 1, 2], [0], [0]>} : vector<8x8x8xf32>, vector<8x8x8xf32>, vector<8x8x8xf32> -> vector<8x8x8xf32>
    "tpu.trace_stop"() : () -> ()
    %c0_17 = arith.constant 0 : index
    %c0_18 = arith.constant 0 : index
    %c8 = arith.constant 8 : index
    %37 = vector.load %arg7[%c0_17, %c0_18, %c8] : memref<8x8x128xf32, #tpu.memory_space<vmem>>, vector<8x8x8xf32>
    tpu.vector_store %arg7[%c0_17, %c0_18, %c8], %36 {strides = array<i32>} : memref<8x8x128xf32, #tpu.memory_space<vmem>>, vector<8x8x8xf32>,
    %38 = vector.extract_strided_slice %3 {offsets = [0, 0, 16], sizes = [8, 8, 8], strides = [1, 1, 1]} : vector<8x8x96xf32> to vector<8x8x8xf32>
    %39 = vector.extract_strided_slice %3 {offsets = [0, 0, 48], sizes = [8, 8, 8], strides = [1, 1, 1]} : vector<8x8x96xf32> to vector<8x8x8xf32>
    %40 = vector.extract_strided_slice %3 {offsets = [0, 0, 80], sizes = [8, 8, 8], strides = [1, 1, 1]} : vector<8x8x96xf32> to vector<8x8x8xf32>
    "tpu.trace_start"() <{level = 10 : i32, message = "bnd,bmd->bnm"}> : () -> ()
    %cst_19 = arith.constant dense<0.000000e+00> : vector<8x8x8xf32>
    %41 = tpu.matmul %38, %39, %cst_19 {dimension_numbers = #tpu.dot_dimension_numbers<[2], [2], [1], [1], [0, 0, 0, 1, 1, 1], [0], [0]>} : vector<8x8x8xf32>, vector<8x8x8xf32>, vector<8x8x8xf32> -> vector<8x8x8xf32>
    "tpu.trace_stop"() : () -> ()
    %cst_20 = arith.constant dense<0xFF800000> : vector<8x8xf32>
    %42 = vector.multi_reduction <maximumf>, %41, %cst_20 [2] : vector<8x8x8xf32> to vector<8x8xf32>
    %43 = vector.shape_cast %42 : vector<8x8xf32> to vector<8x8x1xf32>
    %44 = vector.broadcast %43 : vector<8x8x1xf32> to vector<8x8x8xf32>
    %45 = arith.subf %41, %44 : vector<8x8x8xf32>
    %46 = math.exp %45 : vector<8x8x8xf32>
    %cst_21 = arith.constant dense<0.000000e+00> : vector<8x8xf32>
    %47 = vector.multi_reduction <add>, %46, %cst_21 [2] : vector<8x8x8xf32> to vector<8x8xf32>
    %48 = vector.shape_cast %47 : vector<8x8xf32> to vector<8x8x1xf32>
    %49 = tpu.reciprocal %48 {approx = true} : vector<8x8x1xf32> -> vector<8x8x1xf32>
    %50 = vector.broadcast %49 : vector<8x8x1xf32> to vector<8x8x8xf32>
    %51 = arith.mulf %46, %50 : vector<8x8x8xf32>
    "tpu.trace_start"() <{level = 10 : i32, message = "bnm,bmd->bnd"}> : () -> ()
    %cst_22 = arith.constant dense<0.000000e+00> : vector<8x8x8xf32>
    %52 = tpu.matmul %51, %40, %cst_22 {dimension_numbers = #tpu.dot_dimension_numbers<[2], [1], [1], [2], [0, 0, 0, 1, 1, 2], [0], [0]>} : vector<8x8x8xf32>, vector<8x8x8xf32>, vector<8x8x8xf32> -> vector<8x8x8xf32>
    "tpu.trace_stop"() : () -> ()
    %c0_23 = arith.constant 0 : index
    %c0_24 = arith.constant 0 : index
    %c16 = arith.constant 16 : index
    %53 = vector.load %arg7[%c0_23, %c0_24, %c16] : memref<8x8x128xf32, #tpu.memory_space<vmem>>, vector<8x8x8xf32>
    tpu.vector_store %arg7[%c0_23, %c0_24, %c16], %52 {strides = array<i32>} : memref<8x8x128xf32, #tpu.memory_space<vmem>>, vector<8x8x8xf32>,
    %54 = vector.extract_strided_slice %3 {offsets = [0, 0, 24], sizes = [8, 8, 8], strides = [1, 1, 1]} : vector<8x8x96xf32> to vector<8x8x8xf32>
    %55 = vector.extract_strided_slice %3 {offsets = [0, 0, 56], sizes = [8, 8, 8], strides = [1, 1, 1]} : vector<8x8x96xf32> to vector<8x8x8xf32>
    %56 = vector.extract_strided_slice %3 {offsets = [0, 0, 88], sizes = [8, 8, 8], strides = [1, 1, 1]} : vector<8x8x96xf32> to vector<8x8x8xf32>
    "tpu.trace_start"() <{level = 10 : i32, message = "bnd,bmd->bnm"}> : () -> ()
    %cst_25 = arith.constant dense<0.000000e+00> : vector<8x8x8xf32>
    %57 = tpu.matmul %54, %55, %cst_25 {dimension_numbers = #tpu.dot_dimension_numbers<[2], [2], [1], [1], [0, 0, 0, 1, 1, 1], [0], [0]>} : vector<8x8x8xf32>, vector<8x8x8xf32>, vector<8x8x8xf32> -> vector<8x8x8xf32>
    "tpu.trace_stop"() : () -> ()
    %cst_26 = arith.constant dense<0xFF800000> : vector<8x8xf32>
    %58 = vector.multi_reduction <maximumf>, %57, %cst_26 [2] : vector<8x8x8xf32> to vector<8x8xf32>
    %59 = vector.shape_cast %58 : vector<8x8xf32> to vector<8x8x1xf32>
    %60 = vector.broadcast %59 : vector<8x8x1xf32> to vector<8x8x8xf32>
    %61 = arith.subf %57, %60 : vector<8x8x8xf32>
    %62 = math.exp %61 : vector<8x8x8xf32>
    %cst_27 = arith.constant dense<0.000000e+00> : vector<8x8xf32>
    %63 = vector.multi_reduction <add>, %62, %cst_27 [2] : vector<8x8x8xf32> to vector<8x8xf32>
    %64 = vector.shape_cast %63 : vector<8x8xf32> to vector<8x8x1xf32>
    %65 = tpu.reciprocal %64 {approx = true} : vector<8x8x1xf32> -> vector<8x8x1xf32>
    %66 = vector.broadcast %65 : vector<8x8x1xf32> to vector<8x8x8xf32>
    %67 = arith.mulf %62, %66 : vector<8x8x8xf32>
    "tpu.trace_start"() <{level = 10 : i32, message = "bnm,bmd->bnd"}> : () -> ()
    %cst_28 = arith.constant dense<0.000000e+00> : vector<8x8x8xf32>
    %68 = tpu.matmul %67, %56, %cst_28 {dimension_numbers = #tpu.dot_dimension_numbers<[2], [1], [1], [2], [0, 0, 0, 1, 1, 2], [0], [0]>} : vector<8x8x8xf32>, vector<8x8x8xf32>, vector<8x8x8xf32> -> vector<8x8x8xf32>
    "tpu.trace_stop"() : () -> ()
    %c0_29 = arith.constant 0 : index
    %c0_30 = arith.constant 0 : index
    %c24 = arith.constant 24 : index
    %69 = vector.load %arg7[%c0_29, %c0_30, %c24] : memref<8x8x128xf32, #tpu.memory_space<vmem>>, vector<8x8x8xf32>
    tpu.vector_store %arg7[%c0_29, %c0_30, %c24], %68 {strides = array<i32>} : memref<8x8x128xf32, #tpu.memory_space<vmem>>, vector<8x8x8xf32>,
    %c0_31 = arith.constant 0 : index
    %c0_32 = arith.constant 0 : index
    %c0_33 = arith.constant 0 : index
    %70 = vector.load %arg7[%c0_31, %c0_32, %c0_33] : memref<8x8x128xf32, #tpu.memory_space<vmem>>, vector<8x8x128xf32>
    %71 = vector.shape_cast %70 : vector<8x8x128xf32> to vector<64x128xf32>
    %c0_34 = arith.constant 0 : index
    %c0_35 = arith.constant 0 : index
    %72 = vector.load %arg3[%c0_34, %c0_35] : memref<128x16xf32, #tpu.memory_space<vmem>>, vector<128x16xf32>
    %cst_36 = arith.constant dense<0.000000e+00> : vector<64x16xf32>
    %73 = tpu.matmul %71, %72, %cst_36 {dimension_numbers = #tpu.dot_dimension_numbers<[1], [0], [0], [1], [0, 0, 1, 1], [], []>} : vector<64x128xf32>, vector<128x16xf32>, vector<64x16xf32> -> vector<64x16xf32>
    %c0_37 = arith.constant 0 : index
    %c0_38 = arith.constant 0 : index
    %74 = vector.load %arg4[%c0_37, %c0_38] : memref<1x16xf32, #tpu.memory_space<vmem>>, vector<1x16xf32>
    %75 = vector.broadcast %74 : vector<1x16xf32> to vector<64x16xf32>
    %76 = arith.addf %73, %75 : vector<64x16xf32>
    %77 = math.tanh %76 : vector<64x16xf32>
    %78 = vector.shape_cast %77 : vector<64x16xf32> to vector<8x8x16xf32>
    %c0_39 = arith.constant 0 : index
    %c0_40 = arith.constant 0 : index
    %79 = vector.load %arg5[%c0_39, %c0_40] : memref<1x16xf32, #tpu.memory_space<vmem>>, vector<1x16xf32>
    %80 = vector.shape_cast %79 : vector<1x16xf32> to vector<1x1x16xf32>
    %81 = vector.broadcast %80 : vector<1x1x16xf32> to vector<8x8x16xf32>
    %82 = arith.mulf %78, %81 : vector<8x8x16xf32>
    %cst_41 = arith.constant dense<0.000000e+00> : vector<8x8xf32>
    %83 = vector.multi_reduction <add>, %82, %cst_41 [2] : vector<8x8x16xf32> to vector<8x8xf32>
    %cst_42 = arith.constant dense<0xFF800000> : vector<8xf32>
    %84 = vector.multi_reduction <maximumf>, %83, %cst_42 [1] : vector<8x8xf32> to vector<8xf32>
    %85 = vector.shape_cast %84 : vector<8xf32> to vector<8x1xf32>
    %86 = vector.broadcast %85 : vector<8x1xf32> to vector<8x8xf32>
    %87 = arith.subf %83, %86 : vector<8x8xf32>
    %88 = math.exp %87 : vector<8x8xf32>
    %cst_43 = arith.constant dense<0.000000e+00> : vector<8xf32>
    %89 = vector.multi_reduction <add>, %88, %cst_43 [1] : vector<8x8xf32> to vector<8xf32>
    %90 = vector.shape_cast %89 : vector<8xf32> to vector<8x1xf32>
    %91 = tpu.reciprocal %90 {approx = true} : vector<8x1xf32> -> vector<8x1xf32>
    %92 = vector.broadcast %91 : vector<8x1xf32> to vector<8x8xf32>
    %93 = arith.mulf %88, %92 : vector<8x8xf32>
    %94 = vector.shape_cast %93 : vector<8x8xf32> to vector<8x8x1xf32>
    %95 = vector.broadcast %94 : vector<8x8x1xf32> to vector<8x8x128xf32>
    %96 = arith.mulf %95, %70 : vector<8x8x128xf32>
    %cst_44 = arith.constant dense<0.000000e+00> : vector<8x128xf32>
    %97 = vector.multi_reduction <add>, %96, %cst_44 [1] : vector<8x8x128xf32> to vector<8x128xf32>
    %c0_45 = arith.constant 0 : index
    %c0_46 = arith.constant 0 : index
    %98 = vector.load %arg6[%c0_45, %c0_46] : memref<8x128xf32, #tpu.memory_space<vmem>>, vector<8x128xf32>
    tpu.vector_store %arg6[%c0_45, %c0_46], %97 {strides = array<i32>} : memref<8x128xf32, #tpu.memory_space<vmem>>, vector<8x128xf32>,
    return
  }
  func.func @transform_0(%arg0: i32) -> (i32, i32) {
    %c0_i32 = arith.constant 0 : i32
    %c0_i32_0 = arith.constant 0 : i32
    return %arg0, %c0_i32 : i32, i32
  }
  func.func @transform_1(%arg0: i32) -> (i32, i32) {
    %c0_i32 = arith.constant 0 : i32
    %c0_i32_0 = arith.constant 0 : i32
    %c0_i32_1 = arith.constant 0 : i32
    return %c0_i32, %c0_i32_0 : i32, i32
  }
  func.func @transform_2(%arg0: i32) -> (i32, i32) {
    %c0_i32 = arith.constant 0 : i32
    %c0_i32_0 = arith.constant 0 : i32
    %c0_i32_1 = arith.constant 0 : i32
    return %c0_i32, %c0_i32_0 : i32, i32
  }
  func.func @transform_3(%arg0: i32) -> (i32, i32) {
    %c0_i32 = arith.constant 0 : i32
    %c0_i32_0 = arith.constant 0 : i32
    %c0_i32_1 = arith.constant 0 : i32
    return %c0_i32, %c0_i32_0 : i32, i32
  }
  func.func @transform_4(%arg0: i32) -> (i32, i32) {
    %c0_i32 = arith.constant 0 : i32
    %c0_i32_0 = arith.constant 0 : i32
    %c0_i32_1 = arith.constant 0 : i32
    return %c0_i32, %c0_i32_0 : i32, i32
  }
  func.func @transform_5(%arg0: i32) -> (i32, i32) {
    %c0_i32 = arith.constant 0 : i32
    %c0_i32_0 = arith.constant 0 : i32
    return %arg0, %c0_i32 : i32, i32
  }
}

</mosaic_0001>

<bundles_post_ra>
// kernel: tpu_custom_call.1
= control target key start
LH: loop header
LB: loop body
LE: loop exit
PB: predicated region body
PF: predicated region fallthrough
CT: control target
= control target key end

     0   :  { %10 = vsyncpa [#allocation4], 0  ;;  %s8561_s0 = inlined_call_operand.vmem [shape: f32[128,32], index: 0, kind: input, shape index: {}]   ;;  %s8562_s1 = inlined_call_operand.vmem [shape: f32[32,96], index: 1, kind: input, shape index: {}]   ;;  %s8563_s2 = inlined_call_operand.vmem [shape: f32[128,16], index: 2, kind: input, shape index: {}]   ;;  %s8564_s3 = inlined_call_operand.vmem [shape: f32[1,16], index: 3, kind: input, shape index: {}]   ;;  %s8565_s4 = inlined_call_operand.vmem [shape: f32[1,16], index: 4, kind: input, shape index: {}]   ;;  %s8566_s5 = inlined_call_operand.hbm [shape: f32[16,128], index: 5, kind: output, shape index: {}]  }
   0x1   :  { %12 = vsyncpa [#allocation4 + $0x1], 0  ;;  %s7437_s18 = smov 0   ;;  %s7439_s19 = smov 0  }
   0x2   :  { %s7441_s20 = smov 0   ;;  %s7443_s21 = smov 0  }
   0x3 LB: > { %s7458_s22 = sadd.s32 4294967295, %s7387_s21   ;;  %s6400_s23 = sadd.s32 4294967294, %s7387_s21   ;;  %s7387_s21 = sphi %s7443_s21, %s8572_s21   ;;  %s7383_s20 = sphi %s7441_s20, %s8571_s20   ;;  %s7379_s19 = sphi %s7439_s19, %s8570_s19   ;;  %s7375_s18 = sphi %s7437_s18, %s8569_s18  }
   0x4   : > { %s7462_s24 = sadd.s32 1, %s7387_s21   ;;  %s135_s25 = sadd.s32 1, %s7383_s20 }
   0x5   : > { %s132_s26 = ssub.s32 %s7387_s21, %s7462_s24  ;;  %p145_p0 = scmp.ne.s32.totalorder %s7383_s20, %s7379_s19 }
   0x6   : > { %p133_p1 = scmp.eq.s32.totalorder %s132_s26, 0  ;;  %p146_p2 = scmp.eq.s32.totalorder %s7458_s22, 1 }
   0x7   : > { %p151_p3 = scmp.ne.s32.totalorder %s7379_s19, %s7375_s18  ;;  %p152_p4 = scmp.eq.s32.totalorder %s6400_s23, 1 }
   0x8   : > { %s7473_s27 = scalar_select %p133_p1, %s7383_s20, %s135_s25  }
   0x9   : > { %p7475_p5 = por %p146_p2, %p145_p0  ;;  %p7479_p6 = por %p152_p4, %p151_p3 }
   0xa   : > { %p6403_p7 = scmp.ge.s32.totalorder %s7387_s21, 1  ;;  %p191_p8 = scmp.lt.s32.totalorder %s7387_s21, 3 }
   0xc   : > { %p192_p9 = pnand %p6403_p7, %p191_p8 }
   0xd   : > { %v233_v0 = vld [vmem:[%s8562_s1] sm:$0xff] (!%p192_p9)  ;;  %v234_v1 = vld [vmem:[%s8562_s1 + $0x8] sm:$0xff] (!%p192_p9)  ;;  %v235_v2 = vld [vmem:[%s8562_s1 + $0x10] sm:$0xff] (!%p192_p9)  ;;  %s6405_s11 = sshll.u32 (!%p192_p9), %s7458_s22, 3  ;;  %vm237_vm0 = vcmask (!%p192_p9), 261120   ;;  %v7389_v14 = vmov (!%p192_p9), 0.0  }
   0xe   : > { %195 = sbr.rel (%p192_p9) target bundleno = 4015 (0xfaf), region = 40  ;;  %v7065_v3 = vpack.c.bf16 (!%p192_p9), %v234_v1, %v233_v0  ;;  %v236_v4 = vld [vmem:[%s8562_s1 + $0x18] sm:$0xff] (!%p192_p9)  ;;  %p220_p10 = scmp.lt.s32.totalorder (!%p192_p9), %s6405_s11, 15  ;;  %6731 = vmatprep.subr.mxu1 (!%p192_p9), %v7389_v14  ;;  %vm7390_vm1 = vmmov (!%p192_p9), 0   ;;  %vm379_vm2 = vcmask (!%p192_p9), 64512   ;;  %vm367_vm3 = vcmask (!%p192_p9), 1047808  }
   0xf   : > { %v7069_v5 = vpack.c.bf16 (!%p192_p9), %v236_v4, %v235_v2  ;;  %6733 = vmatprep.mubr.msk.f32.mxu1 (!%p192_p9), %vm7390_vm1, %v7389_v14  ;;  %s7391_s23 = smov (!%p192_p9), 96   ;;  %s7392_s25 = smov (!%p192_p9), 64   ;;  %368 = vst.msk [vmem:[#allocation2] sm:$0xff] (!%p192_p9), %vm367_vm3, %v7389_v14  ;;  %369 = vst.msk [vmem:[#allocation2 + $0x8] sm:$0xff] (!%p192_p9), %vm367_vm3, %v7389_v14  ;;  %vm3049_vm4 = vcmask (!%p192_p9), 130112   ;;  %vm4410_vm5 = vcmask (!%p192_p9), 195712  }
  0x10   : > { %7066 = vmatprep.subr.bf16.mxu0 (!%p192_p9), %v7065_v3  ;;  %s7393_s26 = smov (!%p192_p9), 88   ;;  %s7394_s30 = smov (!%p192_p9), 120   ;;  %370 = vst.msk [vmem:[#allocation2 + $0x10] sm:$0xff] (!%p192_p9), %vm367_vm3, %v7389_v14  ;;  %371 = vst.msk [vmem:[#allocation2 + $0x18] sm:$0xff] (!%p192_p9), %vm367_vm3, %v7389_v14  ;;  %vm5771_vm6 = vcmask (!%p192_p9), 261312   ;;  %vm5939_vm7 = vcmask (!%p192_p9), 130048  }
  0x11   : > { %7068 = vmatpush3.bf16.msra.mxu0 (!%p192_p9), %v7065_v3  ;;  %372 = vst.msk [vmem:[#allocation2 + $0x20] sm:$0xff] (!%p192_p9), %vm367_vm3, %v7389_v14  ;;  %373 = vst.msk [vmem:[#allocation2 + $0x28] sm:$0xff] (!%p192_p9), %vm367_vm3, %v7389_v14  ;;  %s7395_s6 = smov (!%p192_p9), 56   ;;  %s7396_s7 = smov (!%p192_p9), 80   ;;  %vm6006_vm8 = vcmask (!%p192_p9), 1041409   ;;  %vm6008_vm9 = vcmask (!%p192_p9), 1042434  }
  0x12   : > { %7070 = vmatprep.subr.bf16.mxu0 (!%p192_p9), %v7069_v5  ;;  %374 = vst.msk [vmem:[#allocation2 + $0x30] sm:$0xff] (!%p192_p9), %vm367_vm3, %v7389_v14  ;;  %375 = vst.msk [vmem:[#allocation2 + $0x38] sm:$0xff] (!%p192_p9), %vm367_vm3, %v7389_v14  ;;  %s7397_s8 = smov (!%p192_p9), 112   ;;  %s7398_s9 = smov (!%p192_p9), 48   ;;  %vm6010_vm10 = vcmask (!%p192_p9), 1043459   ;;  %vm6012_vm11 = vcmask (!%p192_p9), 1044484  }
  0x13   : > { %s7399_s10 = smov (!%p192_p9), 72   ;;  %s7401_s12 = smov (!%p192_p9), 40   ;;  %vm6014_vm12 = vcmask (!%p192_p9), 1045509   ;;  %vm6016_vm13 = vcmask (!%p192_p9), 1046534   ;;  %vm6018_vm14 = vcmask (!%p192_p9), 1047559  }
  0x14   : > { %s7402_s13 = smov (!%p192_p9), 8   ;;  %s7404_s15 = smov (!%p192_p9), 24  }
  0x15   : > { %s8574_s11 = smov (!%p220_p10, %s6405_s11), 15  ;;  %7072 = vmatpush3.bf16.msra.mxu0 %v7069_v5 }
  0x16   : > { %s6406_s14 = sshll.u32 %s8574_s11, 3  ;;  %6701 = vmatprep.subr.mxu0 %v7389_v14  ;;  %s7400_s11 = smov 104  }
  0x17   : > { %s223_s17 = scalar_lea.vmem %s8561_s0, %s6406_s14  ;;  %s7403_s14 = smov 16  }
  0x18   : > { %v225_v6 = vld [vmem:[%s223_s17] sm:$0xff]  ;;  %v226_v7 = vld [vmem:[%s223_s17 + $0x8] sm:$0xff]  ;;  %v227_v8 = vld [vmem:[%s223_s17 + $0x10] sm:$0xff] }
  0x19   : > { %6689 = vmatprep.mubr.msk.f32.mxu0 %vm237_vm0, %v225_v6  ;;  %v228_v9 = vld [vmem:[%s223_s17 + $0x18] sm:$0xff]  ;;  %v229_v10 = vld [vmem:[%s223_s17 + $0x20] sm:$0xff]  ;;  %v230_v11 = vld [vmem:[%s223_s17 + $0x28] sm:$0xff] }
  0x1a   : > { %6690 = vmatmul.mubr.msk.f32.vlgmr.msra.gmra.mrb[0].mxu0 %vm237_vm0, %v226_v7  ;;  %v231_v12 = vld [vmem:[%s223_s17 + $0x30] sm:$0xff]  ;;  %v232_v13 = vld [vmem:[%s223_s17 + $0x38] sm:$0xff] }
  0x1b   : > { %6692 = vmatprep.mubr.msk.f32.mxu0 %vm237_vm0, %v227_v8 }
  0x1e   : > { %6693 = vmatmul.mubr.msk.f32.gmra.mrb[2].mxu0 %vm237_vm0, %v228_v9 }
  0x1f   : > { %6695 = vmatprep.mubr.msk.f32.mxu0 %vm237_vm0, %v229_v10 }
  0x22   : > { %6696 = vmatmul.mubr.msk.f32.gmra.mrb[4].mxu0 %vm237_vm0, %v230_v11 }
  0x23   : > { %6698 = vmatprep.mubr.msk.f32.mxu0 %vm237_vm0, %v231_v12 }
  0x26   : > { %6699 = vmatmul.mubr.msk.f32.gmra.mrb[6].mxu0 %vm237_vm0, %v232_v13 }
  0x27   : > { %6703 = vmatprep.mubr.msk.f32.mxu0 %vm7390_vm1, %v7389_v14 }
  0xed   : > { %v7515_v15 = vpop.f32.mrb[0].mxu0 }
  0xee   : > { %v7517_v16 = vpop.f32.mrb[1].mxu0 }
  0xef   : > { %377 = vrot.lane.b32.xlu0 %v7517_v16, %s7391_s23 }
  0xf1   : > { %v7520_v17 = vpop.f32.mrb[2].mxu0 }
  0xf2   : > { %v7522_v18 = vpop.f32.mrb[3].mxu0 }
  0xf3   : > { %455 = vrot.lane.b32.xlu0 %v7515_v15, %s7391_s23  ;;  %532 = vrot.lane.b32.xlu1 %v7522_v18, %s7391_s23 }
  0xf5   : > { %v7526_v19 = vpop.f32.mrb[4].mxu0 }
  0xf6   : > { %v7528_v20 = vpop.f32.mrb[5].mxu0 }
  0xf7   : > { %686 = vrot.lane.b32.xlu0 %v7528_v20, %s7391_s23  ;;  %609 = vrot.lane.b32.xlu1 %v7520_v17, %s7391_s23 }
  0xf9   : > { %v7532_v21 = vpop.f32.mrb[6].mxu0 }
  0xfa   : > { %v7534_v22 = vpop.f32.mrb[7].mxu0 }
  0xfb   : > { %840 = vrot.lane.b32.xlu0 %v7534_v22, %s7391_s23  ;;  %763 = vrot.lane.b32.xlu1 %v7526_v19, %s7391_s23 }
  0xff   : > { %917 = vrot.lane.b32.xlu1 %v7532_v21, %s7391_s23 }
 0x161   : > { %v378_v23 = vpop.permute.xlu0 %377 }
 0x162   : > { %6702 = vmatpush3.xpose.msk.msra.mxu0 %vm379_vm2, %v378_v23 }
 0x163   : > { %6706 = vmatprep.subr.mxu0 %v7389_v14 }
 0x165   : > { %6704 = vmatmul.mubr.msk.f32.vlgmr.msra.gmra.mrb[8].mxu0 %vm379_vm2, %v7517_v16  ;;  %v456_v24 = vpop.permute.xlu0 %455  ;;  %v533_v25 = vpop.permute.xlu1 %532 }
 0x166   : > { %6707 = vmatpush3.xpose.msk.msra.mxu0 %vm379_vm2, %v456_v24  ;;  %6708 = vmatprep.mubr.msk.f32.mxu0 %vm7390_vm1, %v7389_v14 }
 0x167   : > { %6711 = vmatprep.subr.mxu0 %v7389_v14 }
 0x169   : > { %6709 = vmatmul.mubr.msk.f32.vlgmr.msra.gmra.mrb[10].mxu0 %vm379_vm2, %v7515_v15  ;;  %v687_v26 = vpop.permute.xlu0 %686  ;;  %v610_v27 = vpop.permute.xlu1 %609 }
 0x16a   : > { %6712 = vmatpush3.xpose.msk.msra.mxu0 %vm379_vm2, %v533_v25  ;;  %6713 = vmatprep.mubr.msk.f32.mxu0 %vm7390_vm1, %v7389_v14 }
 0x16b   : > { %6716 = vmatprep.subr.mxu0 %v7389_v14 }
 0x16d   : > { %6714 = vmatmul.mubr.msk.f32.vlgmr.msra.gmra.mrb[12].mxu0 %vm379_vm2, %v7522_v18  ;;  %v841_v28 = vpop.permute.xlu0 %840  ;;  %v764_v29 = vpop.permute.xlu1 %763 }
 0x16e   : > { %6717 = vmatpush3.xpose.msk.msra.mxu0 %vm379_vm2, %v610_v27  ;;  %6732 = vmatpush3.xpose.msk.msra.mxu1 %vm379_vm2, %v841_v28 }
 0x16f   : > { %6718 = vmatprep.mubr.msk.f32.mxu0 %vm7390_vm1, %v7389_v14  ;;  %6721 = vmatprep.subr.mxu0 %v7389_v14 }
 0x170   : > { %6741 = vmatprep.subr.mxu1 %v7389_v14 }
 0x171   : > { %6719 = vmatmul.mubr.msk.f32.vlgmr.msra.gmra.mrb[14].mxu0 %vm379_vm2, %v7520_v17  ;;  %6734 = vmatmul.mubr.msk.f32.vlgmr.msra.gmra.mrb[0].mxu1 %vm379_vm2, %v7534_v22  ;;  %v918_v30 = vpop.permute.xlu1 %917 }
 0x172   : > { %6722 = vmatpush3.xpose.msk.msra.mxu0 %vm379_vm2, %v687_v26  ;;  %6723 = vmatprep.mubr.msk.f32.mxu0 %vm7390_vm1, %v7389_v14 }
 0x173   : > { %6726 = vmatprep.subr.mxu0 %v7389_v14  ;;  %6743 = vmatprep.mubr.msk.f32.mxu1 %vm7390_vm1, %v7389_v14 }
 0x175   : > { %6724 = vmatmul.mubr.msk.f32.vlgmr.msra.gmra.mrb[16].mxu0 %vm379_vm2, %v7528_v20 }
 0x176   : > { %6727 = vmatpush3.xpose.msk.msra.mxu0 %vm379_vm2, %v764_v29  ;;  %6728 = vmatprep.mubr.msk.f32.mxu0 %vm7390_vm1, %v7389_v14 }
 0x177   : > { %6736 = vmatprep.subr.mxu0 %v7389_v14 }
 0x179   : > { %6729 = vmatmul.mubr.msk.f32.vlgmr.msra.gmra.mrb[18].mxu0 %vm379_vm2, %v7526_v19 }
 0x17a   : > { %6737 = vmatpush3.xpose.msk.msra.mxu0 %vm379_vm2, %v918_v30  ;;  %6738 = vmatprep.mubr.msk.f32.mxu0 %vm7390_vm1, %v7389_v14 }
 0x17b   : > { %6746 = vmatprep.subr.mxu0 %v7389_v14 }
 0x17d   : > { %6739 = vmatmul.mubr.msk.f32.vlgmr.msra.gmra.mrb[20].mxu0 %vm379_vm2, %v7532_v21 }
 0x17e   : > { %6748 = vmatprep.mubr.msk.f32.mxu0 %vm7390_vm1, %v7389_v14 }
 0x238   : > { %v450_v31 = vpop.f32.mrb[8].mxu0 }
 0x239   : > { %v6705_v32 = vpop.f32.mrb[9].mxu0  ;;  %v993_v33 = vsel %vm379_vm2, %v450_v31, -inf }
 0x23a   : > { %994 = vmax.xlane.f32.xlu0 %v993_v33 }
 0x23c   : > { %v527_v34 = vpop.f32.mrb[10].mxu0 }
 0x23d   : > { %v6710_v35 = vpop.f32.mrb[11].mxu0  ;;  %v996_v36 = vsel %vm379_vm2, %v527_v34, -inf }
 0x23e   : > { %997 = vmax.xlane.f32.xlu1 %v996_v36 }
 0x240   : > { %v604_v37 = vpop.f32.mrb[12].mxu0 }
 0x241   : > { %v6715_v38 = vpop.f32.mrb[13].mxu0  ;;  %v999_v39 = vsel %vm379_vm2, %v604_v37, -inf }
 0x242   : > { %1000 = vmax.xlane.f32.xlu0 %v999_v39 }
 0x244   : > { %v681_v40 = vpop.f32.mrb[14].mxu0  ;;  %v7590_v41 = vpop.f32.mrb[0].mxu1 }
 0x245   : > { %v6720_v42 = vpop.f32.mrb[15].mxu0  ;;  %v6735_v43 = vpop.f32.mrb[1].mxu1  ;;  %v1002_v44 = vsel %vm379_vm2, %v681_v40, -inf  ;;  %v1011_v50 = vsel %vm379_vm2, %v7590_v41, -inf }
 0x246   : > { %1003 = vmax.xlane.f32.xlu0 %v1002_v44 }
 0x248   : > { %v758_v45 = vpop.f32.mrb[16].mxu0 }
 0x249   : > { %v6725_v46 = vpop.f32.mrb[17].mxu0  ;;  %v1005_v47 = vsel %vm379_vm2, %v758_v45, -inf }
 0x24a   : > { %1006 = vmax.xlane.f32.xlu1 %v1005_v47 }
 0x24c   : > { %v835_v48 = vpop.f32.mrb[18].mxu0 }
 0x24d   : > { %v6730_v49 = vpop.f32.mrb[19].mxu0  ;;  %v1008_v51 = vsel %vm379_vm2, %v835_v48, -inf }
 0x24e   : > { %1012 = vmax.xlane.f32.xlu1 %v1011_v50  ;;  %1009 = vmax.xlane.f32.xlu0 %v1008_v51 }
 0x250   : > { %v7597_v52 = vpop.f32.mrb[20].mxu0 }
 0x251   : > { %v6740_v53 = vpop.f32.mrb[21].mxu0  ;;  %v1014_v54 = vsel %vm379_vm2, %v7597_v52, -inf }
 0x252   : > { %1015 = vmax.xlane.f32.xlu0 %v1014_v54 }
 0x25f   : > { %1081 = vrot.lane.b32.xlu1 %v7517_v16, %s7392_s25 }
 0x263   : > { %1233 = vrot.lane.b32.xlu1 %v7522_v18, %s7392_s25 }
 0x267   : > { %1309 = vrot.lane.b32.xlu1 %v7520_v17, %s7392_s25 }
 0x268   : > { %1157 = vrot.lane.b32.xlu0 %v7515_v15, %s7392_s25 }
 0x26b   : > { %1461 = vrot.lane.b32.xlu1 %v7526_v19, %s7392_s25 }
 0x26c   : > { %1385 = vrot.lane.b32.xlu0 %v7528_v20, %s7392_s25 }
 0x26f   : > { %1613 = vrot.lane.b32.xlu1 %v7532_v21, %s7392_s25 }
 0x270   : > { %1537 = vrot.lane.b32.xlu0 %v7534_v22, %s7392_s25 }
 0x273   : > { %1777 = vrot.lane.b32.xlu1 %v7515_v15, %s7393_s26 }
 0x274   : > { %1699 = vrot.lane.b32.xlu0 %v7517_v16, %s7393_s26 }
 0x277   : > { %1775 = vrot.lane.b32.xlu1 %v7515_v15, %s7394_s30 }
 0x278   : > { %1697 = vrot.lane.b32.xlu0 %v7517_v16, %s7394_s30 }
 0x27b   : > { %1933 = vrot.lane.b32.xlu1 %v7520_v17, %s7393_s26 }
 0x27c   : > { %1855 = vrot.lane.b32.xlu0 %v7522_v18, %s7393_s26 }
 0x2c7   : > { %v995_v55 = vpop.xlane.xlu0 %994 }
 0x2c8   : > { %v1017_v56 = vsub.f32 %v450_v31, %v995_v55 }
 0x2ca   : > { %v1025_v57 = vmul.f32 1.442695, %v1017_v56 }
 0x2cb   : > { %v998_v58 = vpop.xlane.xlu1 %997 }
 0x2cc   : > { %7163 = vpow2.f32 %v1025_v57  ;;  %v1018_v59 = vsub.f32 %v527_v34, %v998_v58 }
 0x2ce   : > { %v1027_v60 = vmul.f32 1.442695, %v1018_v59 }
 0x2cf   : > { %v1001_v61 = vpop.xlane.xlu0 %1000 }
 0x2d0   : > { %7165 = vpow2.f32 %v1027_v60  ;;  %v1019_v62 = vsub.f32 %v604_v37, %v1001_v61 }
 0x2d2   : > { %v1029_v63 = vmul.f32 1.442695, %v1019_v62 }
 0x2d3   : > { %v1004_v0 = vpop.xlane.xlu0 %1003 }
 0x2d4   : > { %7167 = vpow2.f32 %v1029_v63  ;;  %v1020_v1 = vsub.f32 %v681_v40, %v1004_v0 }
 0x2d6   : > { %v7621_v2 = vpop.eup %7163  ;;  %v1031_v3 = vmul.f32 1.442695, %v1020_v1 }
 0x2d7   : > { %v1007_v4 = vpop.xlane.xlu1 %1006  ;;  %v1041_v5 = vsel %vm379_vm2, %v7621_v2, 0.0 }
 0x2d8   : > { %7169 = vpow2.f32 %v1031_v3  ;;  %1042 = vadd.xlane.f32.xlu1 %v1041_v5  ;;  %v1021_v7 = vsub.f32 %v758_v45, %v1007_v4 }
 0x2da   : > { %v7625_v6 = vpop.eup %7165  ;;  %v1033_v23 = vmul.f32 1.442695, %v1021_v7 }
 0x2db   : > { %v1013_v8 = vpop.xlane.xlu1 %1012  ;;  %v1010_v9 = vpop.xlane.xlu0 %1009  ;;  %v1044_v10 = vsel %vm379_vm2, %v7625_v6, 0.0 }
 0x2dc   : > { %v1023_v11 = vsub.f32 %v7590_v41, %v1013_v8  ;;  %v1022_v12 = vsub.f32 %v835_v48, %v1010_v9  ;;  %1045 = vadd.xlane.f32.xlu0 %v1044_v10 }
 0x2de   : > { %v7630_v13 = vpop.eup %7167  ;;  %v1037_v24 = vmul.f32 1.442695, %v1023_v11  ;;  %v1035_v25 = vmul.f32 1.442695, %v1022_v12 }
 0x2df   : > { %v1082_v26 = vpop.permute.xlu1 %1081  ;;  %v1016_v27 = vpop.xlane.xlu0 %1015  ;;  %v1047_v28 = vsel %vm379_vm2, %v7630_v13, 0.0 }
 0x2e0   : > { %7171 = vpow2.f32 %v1037_v24  ;;  %v1024_v29 = vsub.f32 %v7597_v52, %v1016_v27  ;;  %1048 = vadd.xlane.f32.xlu1 %v1047_v28  ;;  %6742 = vmatpush3.msra.mxu1 %v1082_v26 }
 0x2e1   : > { %7173 = vpow2.f32 %v1035_v25  ;;  %6751 = vmatprep.subr.mxu1 %v7389_v14 }
 0x2e2   : > { %v7636_v30 = vpop.eup %7169  ;;  %7175 = vpow2.f32 %v1033_v23  ;;  %v1039_v31 = vmul.f32 1.442695, %v1024_v29 }
 0x2e3   : > { %v1158_v32 = vpop.permute.xlu0 %1157  ;;  %v1050_v33 = vsel %vm379_vm2, %v7636_v30, 0.0  ;;  %v1234_v42 = vpop.permute.xlu1 %1233 }
 0x2e4   : > { %7177 = vpow2.f32 %v1039_v31  ;;  %1051 = vadd.xlane.f32.xlu0 %v1050_v33  ;;  %6747 = vmatpush3.msra.mxu0 %v1158_v32 }
 0x2e5   : > { %6756 = vmatprep.subr.mxu0 %v7389_v14 }
 0x2e7   : > { %v1310_v43 = vpop.permute.xlu1 %1309  ;;  %v1386_v45 = vpop.permute.xlu0 %1385 }
 0x2ea   : > { %v7641_v34 = vpop.eup %7171 }
 0x2eb   : > { %v7643_v35 = vpop.eup %7173  ;;  %v1059_v36 = vsel %vm379_vm2, %v7641_v34, 0.0  ;;  %v1462_v44 = vpop.permute.xlu1 %1461 }
 0x2ec   : > { %v7647_v37 = vpop.eup %7175  ;;  %1060 = vadd.xlane.f32.xlu1 %v1059_v36  ;;  %v1056_v38 = vsel %vm379_vm2, %v7643_v35, 0.0  ;;  %v1538_v47 = vpop.permute.xlu0 %1537 }
 0x2ed   : > { %1057 = vadd.xlane.f32.xlu0 %v1056_v38  ;;  %v1053_v40 = vsel %vm379_vm2, %v7647_v37, 0.0 }
 0x2ee   : > { %v7651_v39 = vpop.eup %7177 }
 0x2ef   : > { %v1062_v41 = vsel %vm379_vm2, %v7651_v39, 0.0  ;;  %v1614_v46 = vpop.permute.xlu1 %1613 }
 0x2f0   : > { %1054 = vadd.xlane.f32.xlu1 %v1053_v40  ;;  %v7687_v49 = vpop.permute.xlu0 %1699 }
 0x2f1   : > { %1063 = vadd.xlane.f32.xlu0 %v1062_v41 }
 0x2f3   : > { %v7685_v48 = vpop.permute.xlu1 %1777 }
 0x2f4   : > { %v7691_v51 = vpop.permute.xlu0 %1697 }
 0x2f7   : > { %v7689_v50 = vpop.permute.xlu1 %1775 }
 0x2f8   : > { %v7695_v53 = vpop.permute.xlu0 %1855 }
 0x2fb   : > { %v7693_v52 = vpop.permute.xlu1 %1933 }
 0x301   : > { %1931 = vrot.lane.b32.xlu1 %v7520_v17, %s7394_s30 }
 0x305   : > { %2089 = vrot.lane.b32.xlu1 %v7526_v19, %s7393_s26 }
 0x307   : > { %1853 = vrot.lane.b32.xlu0 %v7522_v18, %s7394_s30 }
 0x309   : > { %2087 = vrot.lane.b32.xlu1 %v7526_v19, %s7394_s30 }
 0x30b   : > { %2011 = vrot.lane.b32.xlu0 %v7528_v20, %s7393_s26 }
 0x30d   : > { %2245 = vrot.lane.b32.xlu1 %v7532_v21, %s7393_s26 }
 0x30f   : > { %2009 = vrot.lane.b32.xlu0 %v7528_v20, %s7394_s30 }
 0x311   : > { %2243 = vrot.lane.b32.xlu1 %v7532_v21, %s7394_s30 }
 0x313   : > { %2167 = vrot.lane.b32.xlu0 %v7534_v22, %s7393_s26  ;;  %s216_s26 = sand.u32 1, %s7379_s19  }
 0x317   : > { %2165 = vrot.lane.b32.xlu0 %v7534_v22, %s7394_s30  ;;  %s6404_s30 = sshll.u32 %s216_s26, 3 }
 0x365   : > { %v1043_v54 = vpop.xlane.xlu1 %1042 }
 0x366   : > { %7179 = vrcp.f32 %v1043_v54 }
 0x369   : > { %v1046_v55 = vpop.xlane.xlu0 %1045 }
 0x36a   : > { %7181 = vrcp.f32 %v1046_v55 }
 0x36d   : > { %v1049_v56 = vpop.xlane.xlu1 %1048 }
 0x36e   : > { %7183 = vrcp.f32 %v1049_v56 }
 0x370   : > { %v7180_v57 = vpop.eup %7179 }
 0x371   : > { %v1052_v58 = vpop.xlane.xlu0 %1051  ;;  %v1073_v59 = vmul.f32 %v7180_v57, %v7621_v2 }
 0x372   : > { %7185 = vrcp.f32 %v1052_v58 }
 0x373   : > { %6744 = vmatmul.mubr.msk.f32.vlgmr.msra.gmra.mrb[2].mxu1 %vm379_vm2, %v1073_v59 }
 0x374   : > { %v7182_v60 = vpop.eup %7181  ;;  %6752 = vmatpush3.msra.mxu1 %v1234_v42  ;;  %6753 = vmatprep.mubr.msk.f32.mxu1 %vm7390_vm1, %v7389_v14 }
 0x375   : > { %v1074_v61 = vmul.f32 %v7182_v60, %v7625_v6  ;;  %6761 = vmatprep.subr.mxu1 %v7389_v14 }
 0x377   : > { %6749 = vmatmul.mubr.msk.f32.vlgmr.msra.gmra.mrb[22].mxu0 %vm379_vm2, %v1074_v61 }
 0x378   : > { %v7184_v62 = vpop.eup %7183  ;;  %6757 = vmatpush3.msra.mxu0 %v1310_v43  ;;  %6758 = vmatprep.mubr.msk.f32.mxu0 %vm7390_vm1, %v7389_v14 }
 0x379   : > { %v1061_v63 = vpop.xlane.xlu1 %1060  ;;  %v1075_v0 = vmul.f32 %v7184_v62, %v7630_v13  ;;  %6766 = vmatprep.subr.mxu0 %v7389_v14 }
 0x37a   : > { %v1058_v1 = vpop.xlane.xlu0 %1057 }
 0x37b   : > { %7187 = vrcp.f32 %v1058_v1  ;;  %6754 = vmatmul.mubr.msk.f32.vlgmr.msra.gmra.mrb[4].mxu1 %vm379_vm2, %v1075_v0 }
 0x37c   : > { %v7186_v2 = vpop.eup %7185  ;;  %6762 = vmatpush3.msra.mxu1 %v1386_v45  ;;  %6763 = vmatprep.mubr.msk.f32.mxu1 %vm7390_vm1, %v7389_v14 }
 0x37d   : > { %v1055_v3 = vpop.xlane.xlu1 %1054  ;;  %v1076_v4 = vmul.f32 %v7186_v2, %v7636_v30  ;;  %6771 = vmatprep.subr.mxu1 %v7389_v14 }
 0x37e   : > { %7189 = vrcp.f32 %v1055_v3  ;;  %v1064_v5 = vpop.xlane.xlu0 %1063 }
 0x37f   : > { %7191 = vrcp.f32 %v1064_v5  ;;  %6759 = vmatmul.mubr.msk.f32.vlgmr.msra.gmra.mrb[24].mxu0 %vm379_vm2, %v1076_v4 }
 0x380   : > { %7193 = vrcp.f32 %v1061_v63  ;;  %6767 = vmatpush3.msra.mxu0 %v1462_v44  ;;  %6768 = vmatprep.mubr.msk.f32.mxu0 %vm7390_vm1, %v7389_v14 }
 0x381   : > { %6776 = vmatprep.subr.mxu0 %v7389_v14  ;;  %v1932_v7 = vpop.permute.xlu1 %1931 }
 0x382   : > { %v1854_v11 = vpop.permute.xlu0 %1853 }
 0x385   : > { %v7188_v6 = vpop.eup %7187  ;;  %v2090_v24 = vpop.permute.xlu1 %2089 }
 0x386   : > { %v1078_v8 = vmul.f32 %v7188_v6, %v7643_v35  ;;  %v2012_v26 = vpop.permute.xlu0 %2011 }
 0x388   : > { %v7190_v9 = vpop.eup %7189  ;;  %6769 = vmatmul.mubr.msk.f32.vlgmr.msra.gmra.mrb[26].mxu0 %vm379_vm2, %v1078_v8 }
 0x389   : > { %v7192_v10 = vpop.eup %7191  ;;  %6777 = vmatpush3.msra.mxu0 %v1614_v46  ;;  %6778 = vmatprep.mubr.msk.f32.mxu0 %vm7390_vm1, %v7389_v14  ;;  %v1077_v12 = vmul.f32 %v7190_v9, %v7647_v37  ;;  %v2088_v27 = vpop.permute.xlu1 %2087 }
 0x38a   : > { %v7194_v13 = vpop.eup %7193  ;;  %v1080_v23 = vmul.f32 %v7192_v10, %v7651_v39  ;;  %6786 = vmatprep.subr.mxu0 %v7389_v14  ;;  %v2010_v28 = vpop.permute.xlu0 %2009 }
 0x38b   : > { %6764 = vmatmul.mubr.msk.f32.vlgmr.msra.gmra.mrb[6].mxu1 %vm379_vm2, %v1077_v12  ;;  %v1079_v25 = vmul.f32 %v7194_v13, %v7641_v34 }
 0x38c   : > { %6772 = vmatpush3.msra.mxu1 %v1538_v47  ;;  %6779 = vmatmul.mubr.msk.f32.vlgmr.msra.gmra.mrb[28].mxu0 %vm379_vm2, %v1080_v23 }
 0x38d   : > { %6773 = vmatprep.mubr.msk.f32.mxu1 %vm7390_vm1, %v7389_v14  ;;  %6788 = vmatprep.mubr.msk.f32.mxu0 %vm7390_vm1, %v7389_v14  ;;  %v2246_v29 = vpop.permute.xlu1 %2245 }
 0x38e   : > { %6781 = vmatprep.subr.mxu1 %v7389_v14  ;;  %v2168_v30 = vpop.permute.xlu0 %2167 }
 0x38f   : > { %6774 = vmatmul.mubr.msk.f32.vlgmr.msra.gmra.mrb[8].mxu1 %vm379_vm2, %v1079_v25 }
 0x390   : > { %6787 = vmatpush3.xpose.msk.msra.mxu0 %vm379_vm2, %v7685_v48  ;;  %6783 = vmatprep.mubr.msk.f32.mxu1 %vm7390_vm1, %v7389_v14 }
 0x391   : > { %6796 = vmatprep.subr.mxu0 %v7389_v14  ;;  %v2244_v31 = vpop.permute.xlu1 %2243 }
 0x392   : > { %v2166_v32 = vpop.permute.xlu0 %2165 }
 0x393   : > { %6789 = vmatmul.mubr.msk.f32.vlgmr.msra.gmra.mrb[30].mxu0 %vm379_vm2, %v7689_v50  ;;  %6782 = vmatpush3.xpose.msk.msra.mxu1 %vm379_vm2, %v7687_v49 }
 0x394   : > { %6797 = vmatpush3.xpose.msk.msra.mxu0 %vm379_vm2, %v7693_v52  ;;  %6798 = vmatprep.mubr.msk.f32.mxu0 %vm7390_vm1, %v7389_v14 }
 0x395   : > { %6791 = vmatprep.subr.mxu1 %v7389_v14  ;;  %6806 = vmatprep.subr.mxu0 %v7389_v14 }
 0x396   : > { %6784 = vmatmul.mubr.msk.f32.vlgmr.msra.gmra.mrb[10].mxu1 %vm379_vm2, %v7691_v51 }
 0x397   : > { %6799 = vmatmul.mubr.msk.f32.vlgmr.msra.gmra.mrb[32].mxu0 %vm379_vm2, %v1932_v7  ;;  %6792 = vmatpush3.xpose.msk.msra.mxu1 %vm379_vm2, %v7695_v53 }
 0x398   : > { %6807 = vmatpush3.xpose.msk.msra.mxu0 %vm379_vm2, %v2090_v24  ;;  %6793 = vmatprep.mubr.msk.f32.mxu1 %vm7390_vm1, %v7389_v14 }
 0x399   : > { %6808 = vmatprep.mubr.msk.f32.mxu0 %vm7390_vm1, %v7389_v14  ;;  %6801 = vmatprep.subr.mxu1 %v7389_v14 }
 0x39a   : > { %6794 = vmatmul.mubr.msk.f32.vlgmr.msra.gmra.mrb[12].mxu1 %vm379_vm2, %v1854_v11  ;;  %6816 = vmatprep.subr.mxu0 %v7389_v14 }
 0x39b   : > { %6809 = vmatmul.mubr.msk.f32.vlgmr.msra.gmra.mrb[34].mxu0 %vm379_vm2, %v2088_v27  ;;  %6802 = vmatpush3.xpose.msk.msra.mxu1 %vm379_vm2, %v2012_v26 }
 0x39c   : > { %6817 = vmatpush3.xpose.msk.msra.mxu0 %vm379_vm2, %v2246_v29  ;;  %6803 = vmatprep.mubr.msk.f32.mxu1 %vm7390_vm1, %v7389_v14 }
 0x39d   : > { %6818 = vmatprep.mubr.msk.f32.mxu0 %vm7390_vm1, %v7389_v14  ;;  %6811 = vmatprep.subr.mxu1 %v7389_v14 }
 0x39e   : > { %6804 = vmatmul.mubr.msk.f32.vlgmr.msra.gmra.mrb[14].mxu1 %vm379_vm2, %v2010_v28  ;;  %6826 = vmatprep.subr.mxu0 %v7389_v14 }
 0x39f   : > { %6819 = vmatmul.mubr.msk.f32.vlgmr.msra.gmra.mrb[36].mxu0 %vm379_vm2, %v2244_v31  ;;  %6812 = vmatpush3.xpose.msk.msra.mxu1 %vm379_vm2, %v2168_v30 }
 0x3a0   : > { %6813 = vmatprep.mubr.msk.f32.mxu1 %vm7390_vm1, %v7389_v14  ;;  %6821 = vmatprep.subr.mxu1 %v7389_v14 }
 0x3a1   : > { %6828 = vmatprep.mubr.msk.f32.mxu0 %vm7390_vm1, %v7389_v14 }
 0x3a2   : > { %6814 = vmatmul.mubr.msk.f32.vlgmr.msra.gmra.mrb[16].mxu1 %vm379_vm2, %v2166_v32 }
 0x3a3   : > { %6823 = vmatprep.mubr.msk.f32.mxu1 %vm7390_vm1, %v7389_v14 }
 0x446   : > { %v1153_v33 = vpop.f32.mrb[2].mxu1 }
 0x447   : > { %1689 = vst.msk [vmem:[#allocation2] sm:$0xff] %vm379_vm2, %v1153_v33  ;;  %v6745_v34 = vpop.f32.mrb[3].mxu1 }
 0x44a   : > { %v1229_v35 = vpop.f32.mrb[22].mxu0 }
 0x44b   : > { %1690 = vst.msk [vmem:[#allocation2 + $0x8] sm:$0xff] %vm379_vm2, %v1229_v35  ;;  %v6750_v36 = vpop.f32.mrb[23].mxu0 }
 0x44e   : > { %v1305_v37 = vpop.f32.mrb[4].mxu1 }
 0x44f   : > { %1691 = vst.msk [vmem:[#allocation2 + $0x10] sm:$0xff] %vm379_vm2, %v1305_v37  ;;  %v6755_v38 = vpop.f32.mrb[5].mxu1 }
 0x452   : > { %v1381_v39 = vpop.f32.mrb[24].mxu0 }
 0x453   : > { %1692 = vst.msk [vmem:[#allocation2 + $0x18] sm:$0xff] %vm379_vm2, %v1381_v39  ;;  %v6760_v40 = vpop.f32.mrb[25].mxu0 }
 0x45b   : > { %v1533_v41 = vpop.f32.mrb[26].mxu0 }
 0x45c   : > { %1694 = vst.msk [vmem:[#allocation2 + $0x28] sm:$0xff] %vm379_vm2, %v1533_v41  ;;  %v6770_v42 = vpop.f32.mrb[27].mxu0 }
 0x45e   : > { %v1457_v43 = vpop.f32.mrb[6].mxu1 }
 0x45f   : > { %1693 = vst.msk [vmem:[#allocation2 + $0x20] sm:$0xff] %vm379_vm2, %v1457_v43  ;;  %v1685_v44 = vpop.f32.mrb[28].mxu0  ;;  %v6765_v45 = vpop.f32.mrb[7].mxu1 }
 0x460   : > { %1696 = vst.msk [vmem:[#allocation2 + $0x38] sm:$0xff] %vm379_vm2, %v1685_v44  ;;  %v6780_v46 = vpop.f32.mrb[29].mxu0 }
 0x462   : > { %v1609_v47 = vpop.f32.mrb[8].mxu1 }
 0x463   : > { %1695 = vst.msk [vmem:[#allocation2 + $0x30] sm:$0xff] %vm379_vm2, %v1609_v47  ;;  %v6775_v48 = vpop.f32.mrb[9].mxu1 }
 0x466   : > { %v1849_v49 = vpop.f32.mrb[30].mxu0 }
 0x467   : > { %v6790_v50 = vpop.f32.mrb[31].mxu0  ;;  %v2324_v51 = vsel %vm379_vm2, %v1849_v49, -inf }
 0x468   : > { %2325 = vmax.xlane.f32.xlu1 %v2324_v51 }
 0x469   : > { %v1771_v52 = vpop.f32.mrb[10].mxu1 }
 0x46a   : > { %v2005_v53 = vpop.f32.mrb[32].mxu0  ;;  %v6785_v54 = vpop.f32.mrb[11].mxu1  ;;  %v2321_v55 = vsel %vm379_vm2, %v1771_v52, -inf }
 0x46b   : > { %v6800_v56 = vpop.f32.mrb[33].mxu0  ;;  %2322 = vmax.xlane.f32.xlu0 %v2321_v55  ;;  %v2330_v2 = vsel %vm379_vm2, %v2005_v53, -inf }
 0x46d   : > { %v1927_v57 = vpop.f32.mrb[12].mxu1 }
 0x46e   : > { %v7791_v58 = vpop.f32.mrb[34].mxu0  ;;  %v6795_v59 = vpop.f32.mrb[13].mxu1  ;;  %v2327_v60 = vsel %vm379_vm2, %v1927_v57, -inf }
 0x46f   : > { %v6810_v61 = vpop.f32.mrb[35].mxu0  ;;  %2328 = vmax.xlane.f32.xlu0 %v2327_v60  ;;  %v2336_v6 = vsel %vm379_vm2, %v7791_v58, -inf }
 0x471   : > { %v2083_v62 = vpop.f32.mrb[14].mxu1 }
 0x472   : > { %v7794_v63 = vpop.f32.mrb[36].mxu0  ;;  %v6805_v0 = vpop.f32.mrb[15].mxu1  ;;  %v2333_v1 = vsel %vm379_vm2, %v2083_v62, -inf }
 0x473   : > { %v6820_v3 = vpop.f32.mrb[37].mxu0  ;;  %2334 = vmax.xlane.f32.xlu1 %v2333_v1  ;;  %2331 = vmax.xlane.f32.xlu0 %v2330_v2  ;;  %v2342_v7 = vsel %vm379_vm2, %v7794_v63, -inf }
 0x475   : > { %v7798_v4 = vpop.f32.mrb[16].mxu1 }
 0x476   : > { %v6815_v5 = vpop.f32.mrb[17].mxu1  ;;  %v2339_v8 = vsel %vm379_vm2, %v7798_v4, -inf }
 0x477   : > { %2337 = vmax.xlane.f32.xlu0 %v2336_v6 }
 0x47b   : > { %2343 = vmax.xlane.f32.xlu0 %v2342_v7 }
 0x484   : > { %2409 = vrot.lane.b32.xlu1 %v7517_v16, %s7395_s6 }
 0x491   : > { %2485 = vrot.lane.b32.xlu0 %v7515_v15, %s7395_s6 }
 0x495   : > { %2713 = vrot.lane.b32.xlu0 %v7528_v20, %s7395_s6 }
 0x499   : > { %2865 = vrot.lane.b32.xlu0 %v7534_v22, %s7395_s6 }
 0x49d   : > { %3060 = vrot.lane.b32.xlu0 %v7517_v16, %s7396_s7 }
 0x4a1   : > { %3058 = vrot.lane.b32.xlu0 %v7517_v16, %s7397_s8 }
 0x4a5   : > { %3216 = vrot.lane.b32.xlu0 %v7522_v18, %s7396_s7 }
 0x4a8   : > { %2340 = vmax.xlane.f32.xlu1 %v2339_v8 }
 0x4b9   : > { %2561 = vrot.lane.b32.xlu1 %v7522_v18, %s7395_s6 }
 0x4bd   : > { %2637 = vrot.lane.b32.xlu1 %v7520_v17, %s7395_s6 }
 0x4c1   : > { %2789 = vrot.lane.b32.xlu1 %v7526_v19, %s7395_s6 }
 0x4c5   : > { %2941 = vrot.lane.b32.xlu1 %v7532_v21, %s7395_s6  ;;  %s6514_s6 = sshll.u32 %s7458_s22, 7  ;;  %s6328_s22 = scalar_lea.sflag [#allocation4], %s216_s26 }
 0x4c9   : > { %3138 = vrot.lane.b32.xlu1 %v7515_v15, %s7396_s7 }
 0x4cd   : > { %3136 = vrot.lane.b32.xlu1 %v7515_v15, %s7397_s8 }
 0x4d1   : > { %3294 = vrot.lane.b32.xlu1 %v7520_v17, %s7396_s7 }
 0x4f5   : > { %v2326_v9 = vpop.xlane.xlu1 %2325 }
 0x4f6   : > { %v2346_v10 = vsub.f32 %v1849_v49, %v2326_v9 }
 0x4f8   : > { %v2355_v11 = vmul.f32 1.442695, %v2346_v10  ;;  %v2323_v12 = vpop.xlane.xlu0 %2322 }
 0x4f9   : > { %v2345_v13 = vsub.f32 %v1771_v52, %v2323_v12 }
 0x4fa   : > { %7195 = vpow2.f32 %v2355_v11 }
 0x4fb   : > { %v2353_v23 = vmul.f32 1.442695, %v2345_v13 }
 0x4fc   : > { %v2329_v24 = vpop.xlane.xlu0 %2328 }
 0x4fd   : > { %7197 = vpow2.f32 %v2353_v23  ;;  %v2347_v25 = vsub.f32 %v1927_v57, %v2329_v24 }
 0x4ff   : > { %v2357_v26 = vmul.f32 1.442695, %v2347_v25 }
 0x500   : > { %v2335_v27 = vpop.xlane.xlu1 %2334  ;;  %v2332_v28 = vpop.xlane.xlu0 %2331 }
 0x501   : > { %7199 = vpow2.f32 %v2357_v26  ;;  %v2349_v29 = vsub.f32 %v2083_v62, %v2335_v27  ;;  %v2348_v30 = vsub.f32 %v2005_v53, %v2332_v28 }
 0x503   : > { %v2361_v31 = vmul.f32 1.442695, %v2349_v29  ;;  %v2359_v32 = vmul.f32 1.442695, %v2348_v30 }
 0x504   : > { %v7826_v33 = vpop.eup %7195  ;;  %v2410_v34 = vpop.permute.xlu1 %2409 }
 0x505   : > { %v2338_v35 = vpop.xlane.xlu0 %2337  ;;  %7201 = vpow2.f32 %v2361_v31  ;;  %6822 = vmatpush3.msra.mxu1 %v2410_v34  ;;  %v2372_v37 = vsel %vm379_vm2, %v7826_v33, 0.0 }
 0x506   : > { %v2350_v36 = vsub.f32 %v7791_v58, %v2338_v35  ;;  %7203 = vpow2.f32 %v2359_v32  ;;  %2373 = vadd.xlane.f32.xlu0 %v2372_v37  ;;  %6831 = vmatprep.subr.mxu1 %v7389_v14 }
 0x507   : > { %v7832_v38 = vpop.eup %7197 }
 0x508   : > { %v2363_v39 = vmul.f32 1.442695, %v2350_v36  ;;  %v2369_v41 = vsel %vm379_vm2, %v7832_v38, 0.0 }
 0x509   : > { %v2344_v40 = vpop.xlane.xlu0 %2343  ;;  %2370 = vadd.xlane.f32.xlu1 %v2369_v41 }
 0x50a   : > { %7205 = vpow2.f32 %v2363_v39  ;;  %v2352_v42 = vsub.f32 %v7794_v63, %v2344_v40 }
 0x50b   : > { %v7837_v43 = vpop.eup %7199 }
 0x50c   : > { %v2367_v44 = vmul.f32 1.442695, %v2352_v42  ;;  %v2375_v46 = vsel %vm379_vm2, %v7837_v43, 0.0 }
 0x50d   : > { %v2486_v45 = vpop.permute.xlu0 %2485  ;;  %2376 = vadd.xlane.f32.xlu1 %v2375_v46 }
 0x50e   : > { %7207 = vpow2.f32 %v2367_v44  ;;  %6827 = vmatpush3.msra.mxu0 %v2486_v45 }
 0x50f   : > { %6836 = vmatprep.subr.mxu0 %v7389_v14  ;;  %v7842_v47 = vpop.eup %7201 }
 0x510   : > { %v7844_v48 = vpop.eup %7203  ;;  %v2381_v49 = vsel %vm379_vm2, %v7842_v47, 0.0 }
 0x511   : > { %2382 = vadd.xlane.f32.xlu1 %v2381_v49  ;;  %v2378_v50 = vsel %vm379_vm2, %v7844_v48, 0.0  ;;  %v2714_v62 = vpop.permute.xlu0 %2713 }
 0x512   : > { %2379 = vadd.xlane.f32.xlu0 %v2378_v50 }
 0x514   : > { %v7850_v51 = vpop.eup %7205 }
 0x515   : > { %v2384_v52 = vsel %vm379_vm2, %v7850_v51, 0.0  ;;  %v2866_v0 = vpop.permute.xlu0 %2865 }
 0x516   : > { %2385 = vadd.xlane.f32.xlu0 %v2384_v52 }
 0x518   : > { %v7854_v53 = vpop.eup %7207 }
 0x519   : > { %v2390_v54 = vsel %vm379_vm2, %v7854_v53, 0.0  ;;  %v7897_v2 = vpop.permute.xlu0 %3060 }
 0x51a   : > { %2391 = vadd.xlane.f32.xlu0 %v2390_v54 }
 0x530   : > { %3214 = vrot.lane.b32.xlu0 %v7522_v18, %s7397_s8 }
 0x534   : > { %3372 = vrot.lane.b32.xlu0 %v7528_v20, %s7396_s7 }
 0x535   : > { %v2341_v55 = vpop.xlane.xlu1 %2340 }
 0x536   : > { %v2351_v56 = vsub.f32 %v7798_v4, %v2341_v55  ;;  %v7901_v4 = vpop.permute.xlu0 %3058 }
 0x538   : > { %v2365_v57 = vmul.f32 1.442695, %v2351_v56  ;;  %3370 = vrot.lane.b32.xlu0 %v7528_v20, %s7397_s8 }
 0x539   : > { %v2562_v60 = vpop.permute.xlu1 %2561 }
 0x53a   : > { %7209 = vpow2.f32 %v2365_v57  ;;  %v7903_v6 = vpop.permute.xlu0 %3216 }
 0x53c   : > { %3528 = vrot.lane.b32.xlu0 %v7534_v22, %s7396_s7 }
 0x53d   : > { %v2638_v61 = vpop.permute.xlu1 %2637 }
 0x540   : > { %3526 = vrot.lane.b32.xlu0 %v7534_v22, %s7397_s8 }
 0x541   : > { %v2790_v63 = vpop.permute.xlu1 %2789 }
 0x544   : > { %v7869_v58 = vpop.eup %7209  ;;  %3846 = vrot.lane.b32.xlu0 %v7515_v15, %s7398_s9 }
 0x545   : > { %v2387_v59 = vsel %vm379_vm2, %v7869_v58, 0.0  ;;  %v2942_v1 = vpop.permute.xlu1 %2941 }
 0x546   : > { %2388 = vadd.xlane.f32.xlu1 %v2387_v59 }
 0x548   : > { %4074 = vrot.lane.b32.xlu0 %v7528_v20, %s7398_s9 }
 0x549   : > { %v3139_v3 = vpop.permute.xlu1 %3138 }
 0x54c   : > { %4226 = vrot.lane.b32.xlu0 %v7534_v22, %s7398_s9 }
 0x54d   : > { %v3137_v5 = vpop.permute.xlu1 %3136 }
 0x550   : > { %4421 = vrot.lane.b32.xlu0 %v7517_v16, %s7399_s10 }
 0x551   : > { %v3295_v7 = vpop.permute.xlu1 %3294 }
 0x554   : > { %4419 = vrot.lane.b32.xlu0 %v7517_v16, %s7400_s11 }
 0x557   : > { %3292 = vrot.lane.b32.xlu1 %v7520_v17, %s7397_s8 }
 0x55b   : > { %3450 = vrot.lane.b32.xlu1 %v7526_v19, %s7396_s7 }
 0x55f   : > { %3448 = vrot.lane.b32.xlu1 %v7526_v19, %s7397_s8 }
 0x563   : > { %3606 = vrot.lane.b32.xlu1 %v7532_v21, %s7396_s7  ;;  %s218_s7 = scalar_lea.vmem [#allocation3], %s6404_s30 }
 0x567   : > { %3604 = vrot.lane.b32.xlu1 %v7532_v21, %s7397_s8  ;;  %s6341_s8 = sshll.u32 %s218_s7, 4  ;;  %s8518_s8 = int_to_ptr.vmem [resolvable:$true] %s6341_s8 }
 0x56b   : > { %3770 = vrot.lane.b32.xlu1 %v7517_v16, %s7398_s9 }
 0x56f   : > { %3922 = vrot.lane.b32.xlu1 %v7522_v18, %s7398_s9 }
 0x573   : > { %3998 = vrot.lane.b32.xlu1 %v7520_v17, %s7398_s9 }
 0x577   : > { %4150 = vrot.lane.b32.xlu1 %v7526_v19, %s7398_s9 }
 0x57b   : > { %4302 = vrot.lane.b32.xlu1 %v7532_v21, %s7398_s9 }
 0x57f   : > { %4499 = vrot.lane.b32.xlu1 %v7515_v15, %s7399_s10 }
 0x583   : > { %4497 = vrot.lane.b32.xlu1 %v7515_v15, %s7400_s11 }
 0x593   : > { %v2374_v8 = vpop.xlane.xlu0 %2373 }
 0x594   : > { %7211 = vrcp.f32 %v2374_v8 }
 0x596   : > { %v2371_v9 = vpop.xlane.xlu1 %2370 }
 0x597   : > { %7213 = vrcp.f32 %v2371_v9 }
 0x59a   : > { %v2377_v10 = vpop.xlane.xlu1 %2376 }
 0x59b   : > { %7215 = vrcp.f32 %v2377_v10 }
 0x59e   : > { %v7212_v11 = vpop.eup %7211  ;;  %v2383_v12 = vpop.xlane.xlu1 %2382 }
 0x59f   : > { %7217 = vrcp.f32 %v2383_v12  ;;  %v2380_v13 = vpop.xlane.xlu0 %2379  ;;  %v2402_v23 = vmul.f32 %v7212_v11, %v7826_v33 }
 0x5a0   : > { %7219 = vrcp.f32 %v2380_v13 }
 0x5a1   : > { %v7214_v24 = vpop.eup %7213  ;;  %6829 = vmatmul.mubr.msk.f32.vlgmr.msra.gmra.mrb[38].mxu0 %vm379_vm2, %v2402_v23 }
 0x5a2   : > { %6837 = vmatpush3.msra.mxu0 %v2638_v61  ;;  %v2401_v25 = vmul.f32 %v7214_v24, %v7832_v38  ;;  %6838 = vmatprep.mubr.msk.f32.mxu0 %vm7390_vm1, %v7389_v14 }
 0x5a3   : > { %v2386_v26 = vpop.xlane.xlu0 %2385  ;;  %6846 = vmatprep.subr.mxu0 %v7389_v14 }
 0x5a4   : > { %7221 = vrcp.f32 %v2386_v26  ;;  %6824 = vmatmul.mubr.msk.f32.vlgmr.msra.gmra.mrb[18].mxu1 %vm379_vm2, %v2401_v25 }
 0x5a5   : > { %v7216_v27 = vpop.eup %7215  ;;  %6832 = vmatpush3.msra.mxu1 %v2562_v60  ;;  %6833 = vmatprep.mubr.msk.f32.mxu1 %vm7390_vm1, %v7389_v14 }
 0x5a6   : > { %6841 = vmatprep.subr.mxu1 %v7389_v14  ;;  %v2403_v28 = vmul.f32 %v7216_v27, %v7837_v43 }
 0x5a7   : > { %v2392_v29 = vpop.xlane.xlu0 %2391 }
 0x5a8   : > { %7223 = vrcp.f32 %v2392_v29  ;;  %6834 = vmatmul.mubr.msk.f32.vlgmr.msra.gmra.mrb[20].mxu1 %vm379_vm2, %v2403_v28 }
 0x5a9   : > { %v7218_v30 = vpop.eup %7217  ;;  %6842 = vmatpush3.msra.mxu1 %v2714_v62  ;;  %6843 = vmatprep.mubr.msk.f32.mxu1 %vm7390_vm1, %v7389_v14 }
 0x5aa   : > { %v7220_v31 = vpop.eup %7219  ;;  %6851 = vmatprep.subr.mxu1 %v7389_v14  ;;  %v2405_v32 = vmul.f32 %v7218_v30, %v7842_v47 }
 0x5ab   : > { %v2404_v33 = vmul.f32 %v7220_v31, %v7844_v48  ;;  %v3215_v38 = vpop.permute.xlu0 %3214 }
 0x5ac   : > { %6844 = vmatmul.mubr.msk.f32.vlgmr.msra.gmra.mrb[22].mxu1 %vm379_vm2, %v2405_v32 }
 0x5ad   : > { %6839 = vmatmul.mubr.msk.f32.vlgmr.msra.gmra.mrb[40].mxu0 %vm379_vm2, %v2404_v33  ;;  %6852 = vmatpush3.msra.mxu1 %v2866_v0 }
 0x5ae   : > { %v7222_v34 = vpop.eup %7221  ;;  %6847 = vmatpush3.msra.mxu0 %v2790_v63  ;;  %6848 = vmatprep.mubr.msk.f32.mxu0 %vm7390_vm1, %v7389_v14 }
 0x5af   : > { %6856 = vmatprep.subr.mxu0 %v7389_v14  ;;  %v2406_v35 = vmul.f32 %v7222_v34, %v7850_v51  ;;  %6853 = vmatprep.mubr.msk.f32.mxu1 %vm7390_vm1, %v7389_v14  ;;  %v3373_v39 = vpop.permute.xlu0 %3372 }
 0x5b0   : > { %6861 = vmatprep.subr.mxu1 %v7389_v14 }
 0x5b1   : > { %6849 = vmatmul.mubr.msk.f32.vlgmr.msra.gmra.mrb[42].mxu0 %vm379_vm2, %v2406_v35 }
 0x5b2   : > { %v7224_v36 = vpop.eup %7223  ;;  %6857 = vmatpush3.msra.mxu0 %v2942_v1  ;;  %6858 = vmatprep.mubr.msk.f32.mxu0 %vm7390_vm1, %v7389_v14 }
 0x5b3   : > { %v2408_v37 = vmul.f32 %v7224_v36, %v7854_v53  ;;  %6866 = vmatprep.subr.mxu0 %v7389_v14  ;;  %v3371_v41 = vpop.permute.xlu0 %3370 }
 0x5b5   : > { %6859 = vmatmul.mubr.msk.f32.vlgmr.msra.gmra.mrb[44].mxu0 %vm379_vm2, %v2408_v37 }
 0x5b6   : > { %6868 = vmatprep.mubr.msk.f32.mxu0 %vm7390_vm1, %v7389_v14 }
 0x5b7   : > { %v3529_v44 = vpop.permute.xlu0 %3528 }
 0x5b9   : > { %6867 = vmatpush3.xpose.msk.msra.mxu0 %vm379_vm2, %v3139_v3 }
 0x5ba   : > { %6876 = vmatprep.subr.mxu0 %v7389_v14 }
 0x5bb   : > { %v3527_v48 = vpop.permute.xlu0 %3526 }
 0x5bc   : > { %6869 = vmatmul.mubr.msk.f32.vlgmr.msra.gmra.mrb[46].mxu0 %vm379_vm2, %v3137_v5 }
 0x5bd   : > { %6877 = vmatpush3.xpose.msk.msra.mxu0 %vm379_vm2, %v3295_v7  ;;  %6878 = vmatprep.mubr.msk.f32.mxu0 %vm7390_vm1, %v7389_v14 }
 0x5be   : > { %6886 = vmatprep.subr.mxu0 %v7389_v14 }
 0x5bf   : > { %v3847_v51 = vpop.permute.xlu0 %3846 }
 0x5d3   : > { %v2389_v40 = vpop.xlane.xlu1 %2388 }
 0x5d4   : > { %7225 = vrcp.f32 %v2389_v40 }
 0x5d7   : > { %v3293_v42 = vpop.permute.xlu1 %3292 }
 0x5d8   : > { %6879 = vmatmul.mubr.msk.f32.vlgmr.msra.gmra.mrb[48].mxu0 %vm379_vm2, %v3293_v42 }
 0x5d9   : > { %6888 = vmatprep.mubr.msk.f32.mxu0 %vm7390_vm1, %v7389_v14 }
 0x5db   : > { %v3451_v43 = vpop.permute.xlu1 %3450 }
 0x5dc   : > { %6887 = vmatpush3.xpose.msk.msra.mxu0 %vm379_vm2, %v3451_v43 }
 0x5dd   : > { %6896 = vmatprep.subr.mxu0 %v7389_v14 }
 0x5de   : > { %v7226_v45 = vpop.eup %7225 }
 0x5df   : > { %v3449_v46 = vpop.permute.xlu1 %3448  ;;  %v2407_v47 = vmul.f32 %v7226_v45, %v7869_v58 }
 0x5e0   : > { %6889 = vmatmul.mubr.msk.f32.vlgmr.msra.gmra.mrb[50].mxu0 %vm379_vm2, %v3449_v46 }
 0x5e1   : > { %6854 = vmatmul.mubr.msk.f32.vlgmr.msra.gmra.mrb[24].mxu1 %vm379_vm2, %v2407_v47  ;;  %6898 = vmatprep.mubr.msk.f32.mxu0 %vm7390_vm1, %v7389_v14 }
 0x5e2   : > { %6862 = vmatpush3.xpose.msk.msra.mxu1 %vm379_vm2, %v7897_v2  ;;  %6863 = vmatprep.mubr.msk.f32.mxu1 %vm7390_vm1, %v7389_v14 }
 0x5e3   : > { %v3607_v49 = vpop.permute.xlu1 %3606  ;;  %6871 = vmatprep.subr.mxu1 %v7389_v14 }
 0x5e4   : > { %6897 = vmatpush3.xpose.msk.msra.mxu0 %vm379_vm2, %v3607_v49  ;;  %v8041_v49 = vpop.permute.xlu0 %4074 }
 0x5e5   : > { %6864 = vmatmul.mubr.msk.f32.vlgmr.msra.gmra.mrb[26].mxu1 %vm379_vm2, %v7901_v4  ;;  %6906 = vmatprep.subr.mxu0 %v7389_v14 }
 0x5e6   : > { %6872 = vmatpush3.xpose.msk.msra.mxu1 %vm379_vm2, %v7903_v6  ;;  %6873 = vmatprep.mubr.msk.f32.mxu1 %vm7390_vm1, %v7389_v14 }
 0x5e7   : > { %v3605_v50 = vpop.permute.xlu1 %3604  ;;  %6881 = vmatprep.subr.mxu1 %v7389_v14 }
 0x5e8   : > { %6899 = vmatmul.mubr.msk.f32.vlgmr.msra.gmra.mrb[52].mxu0 %vm379_vm2, %v3605_v50  ;;  %v8043_v50 = vpop.permute.xlu0 %4226 }
 0x5e9   : > { %6907 = vmatpush3.msra.mxu0 %v3847_v51  ;;  %6874 = vmatmul.mubr.msk.f32.vlgmr.msra.gmra.mrb[28].mxu1 %vm379_vm2, %v3215_v38 }
 0x5ea   : > { %6882 = vmatpush3.xpose.msk.msra.mxu1 %vm379_vm2, %v3373_v39  ;;  %6883 = vmatprep.mubr.msk.f32.mxu1 %vm7390_vm1, %v7389_v14 }
 0x5eb   : > { %6891 = vmatprep.subr.mxu1 %v7389_v14  ;;  %6908 = vmatprep.mubr.msk.f32.mxu0 %vm7390_vm1, %v7389_v14  ;;  %v3771_v52 = vpop.permute.xlu1 %3770 }
 0x5ec   : > { %6916 = vmatprep.subr.mxu0 %v7389_v14  ;;  %v8045_v51 = vpop.permute.xlu0 %4421 }
 0x5ed   : > { %6884 = vmatmul.mubr.msk.f32.vlgmr.msra.gmra.mrb[30].mxu1 %vm379_vm2, %v3371_v41 }
 0x5ee   : > { %6892 = vmatpush3.xpose.msk.msra.mxu1 %vm379_vm2, %v3529_v44  ;;  %6893 = vmatprep.mubr.msk.f32.mxu1 %vm7390_vm1, %v7389_v14 }
 0x5ef   : > { %6901 = vmatprep.subr.mxu1 %v7389_v14  ;;  %v8025_v38 = vpop.permute.xlu1 %3922 }
 0x5f1   : > { %6894 = vmatmul.mubr.msk.f32.vlgmr.msra.gmra.mrb[32].mxu1 %vm379_vm2, %v3527_v48 }
 0x5f2   : > { %6902 = vmatpush3.msra.mxu1 %v3771_v52  ;;  %6903 = vmatprep.mubr.msk.f32.mxu1 %vm7390_vm1, %v7389_v14  ;;  %v8047_v52 = vpop.permute.xlu0 %4419 }
 0x5f3   : > { %6911 = vmatprep.subr.mxu1 %v7389_v14  ;;  %v8027_v39 = vpop.permute.xlu1 %3998 }
 0x5f7   : > { %v8029_v40 = vpop.permute.xlu1 %4150 }
 0x5fb   : > { %v8031_v41 = vpop.permute.xlu1 %4302 }
 0x5ff   : > { %v8033_v42 = vpop.permute.xlu1 %4499 }
 0x603   : > { %v8035_v43 = vpop.permute.xlu1 %4497 }
 0x674   : > { %v7988_v53 = vpop.f32.mrb[38].mxu0 }
 0x675   : > { %v6830_v54 = vpop.f32.mrb[39].mxu0 }
 0x677   : > { %v7990_v55 = vpop.f32.mrb[18].mxu1 }
 0x678   : > { %v6825_v56 = vpop.f32.mrb[19].mxu1 }
 0x67b   : > { %v7992_v57 = vpop.f32.mrb[20].mxu1 }
 0x67c   : > { %v6835_v58 = vpop.f32.mrb[21].mxu1 }
 0x67f   : > { %v7994_v59 = vpop.f32.mrb[22].mxu1 }
 0x680   : > { %v7996_v60 = vpop.f32.mrb[40].mxu0  ;;  %v6845_v61 = vpop.f32.mrb[23].mxu1 }
 0x681   : > { %v6840_v62 = vpop.f32.mrb[41].mxu0 }
 0x684   : > { %v7998_v63 = vpop.f32.mrb[42].mxu0 }
 0x685   : > { %v6850_v0 = vpop.f32.mrb[43].mxu0 }
 0x688   : > { %v8000_v1 = vpop.f32.mrb[44].mxu0 }
 0x689   : > { %v6860_v2 = vpop.f32.mrb[45].mxu0 }
 0x68f   : > { %v3210_v3 = vpop.f32.mrb[46].mxu0 }
 0x690   : > { %v6870_v4 = vpop.f32.mrb[47].mxu0  ;;  %v3685_v5 = vsel %vm379_vm2, %v3210_v3, -inf }
 0x691   : > { %3686 = vmax.xlane.f32.xlu1 %v3685_v5 }
 0x6ab   : > { %v3366_v6 = vpop.f32.mrb[48].mxu0 }
 0x6ac   : > { %v6880_v7 = vpop.f32.mrb[49].mxu0  ;;  %v3691_v32 = vsel %vm379_vm2, %v3366_v6, -inf }
 0x6b3   : > { %v8003_v8 = vpop.f32.mrb[50].mxu0 }
 0x6b4   : > { %v8005_v9 = vpop.f32.mrb[24].mxu1  ;;  %v6890_v10 = vpop.f32.mrb[51].mxu0  ;;  %v3697_v36 = vsel %vm379_vm2, %v8003_v8, -inf }
 0x6b5   : > { %v6855_v11 = vpop.f32.mrb[25].mxu1 }
 0x6b8   : > { %v3132_v12 = vpop.f32.mrb[26].mxu1 }
 0x6b9   : > { %v6865_v13 = vpop.f32.mrb[27].mxu1  ;;  %v3682_v23 = vsel %vm379_vm2, %v3132_v12, -inf }
 0x6ba   : > { %3683 = vmax.xlane.f32.xlu0 %v3682_v23 }
 0x6bb   : > { %v8008_v24 = vpop.f32.mrb[52].mxu0 }
 0x6bc   : > { %v3288_v25 = vpop.f32.mrb[28].mxu1  ;;  %v6900_v26 = vpop.f32.mrb[53].mxu0  ;;  %v3703_v37 = vsel %vm379_vm2, %v8008_v24, -inf }
 0x6bd   : > { %v6875_v27 = vpop.f32.mrb[29].mxu1  ;;  %v3688_v28 = vsel %vm379_vm2, %v3288_v25, -inf }
 0x6be   : > { %3689 = vmax.xlane.f32.xlu0 %v3688_v28 }
 0x6c0   : > { %v3444_v29 = vpop.f32.mrb[30].mxu1 }
 0x6c1   : > { %v6885_v30 = vpop.f32.mrb[31].mxu1  ;;  %v3694_v31 = vsel %vm379_vm2, %v3444_v29, -inf }
 0x6c2   : > { %3695 = vmax.xlane.f32.xlu1 %v3694_v31  ;;  %3692 = vmax.xlane.f32.xlu0 %v3691_v32 }
 0x6c4   : > { %v8013_v33 = vpop.f32.mrb[32].mxu1 }
 0x6c5   : > { %v6895_v34 = vpop.f32.mrb[33].mxu1  ;;  %v3700_v35 = vsel %vm379_vm2, %v8013_v33, -inf }
 0x6c6   : > { %3701 = vmax.xlane.f32.xlu1 %v3700_v35  ;;  %3698 = vmax.xlane.f32.xlu0 %v3697_v36 }
 0x6ca   : > { %3704 = vmax.xlane.f32.xlu0 %v3703_v37 }
 0x6d7   : > { %4655 = vrot.lane.b32.xlu1 %v7520_v17, %s7399_s10 }
 0x6e0   : > { %4577 = vrot.lane.b32.xlu0 %v7522_v18, %s7399_s10 }
 0x71e   : > { %v3687_v44 = vpop.xlane.xlu1 %3686 }
 0x71f   : > { %v3707_v45 = vsub.f32 %v3210_v3, %v3687_v44 }
 0x721   : > { %v3716_v46 = vmul.f32 1.442695, %v3707_v45 }
 0x723   : > { %7227 = vpow2.f32 %v3716_v46 }
 0x72d   : > { %v8037_v47 = vpop.eup %7227 }
 0x72e   : > { %v3733_v48 = vsel %vm379_vm2, %v8037_v47, 0.0 }
 0x72f   : > { %3734 = vadd.xlane.f32.xlu0 %v3733_v48 }
 0x747   : > { %v3684_v54 = vpop.xlane.xlu0 %3683 }
 0x748   : > { %v3706_v56 = vsub.f32 %v3132_v12, %v3684_v54 }
 0x74a   : > { %v3714_v58 = vmul.f32 1.442695, %v3706_v56 }
 0x74b   : > { %v3690_v61 = vpop.xlane.xlu0 %3689 }
 0x74c   : > { %7229 = vpow2.f32 %v3714_v58  ;;  %v3708_v62 = vsub.f32 %v3288_v25, %v3690_v61 }
 0x74e   : > { %v3718_v0 = vmul.f32 1.442695, %v3708_v62 }
 0x74f   : > { %v3696_v2 = vpop.xlane.xlu1 %3695  ;;  %v3693_v3 = vpop.xlane.xlu0 %3692 }
 0x750   : > { %7231 = vpow2.f32 %v3718_v0  ;;  %v3710_v4 = vsub.f32 %v3444_v29, %v3696_v2  ;;  %v3709_v5 = vsub.f32 %v3366_v6, %v3693_v3 }
 0x752   : > { %v3722_v7 = vmul.f32 1.442695, %v3710_v4  ;;  %v3720_v10 = vmul.f32 1.442695, %v3709_v5 }
 0x753   : > { %v3699_v11 = vpop.xlane.xlu0 %3698  ;;  %v3702_v32 = vpop.xlane.xlu1 %3701 }
 0x754   : > { %7233 = vpow2.f32 %v3722_v7  ;;  %v3711_v13 = vsub.f32 %v8003_v8, %v3699_v11  ;;  %v3712_v34 = vsub.f32 %v8013_v33, %v3702_v32 }
 0x755   : > { %7235 = vpow2.f32 %v3720_v10 }
 0x756   : > { %v7230_v23 = vpop.eup %7229  ;;  %v3724_v26 = vmul.f32 1.442695, %v3711_v13  ;;  %v3726_v36 = vmul.f32 1.442695, %v3712_v34 }
 0x757   : > { %v3730_v12 = vsel %vm379_vm2, %v7230_v23, 0.0  ;;  %v3705_v35 = vpop.xlane.xlu0 %3704  ;;  %v8102_v61 = vpop.permute.xlu1 %4655 }
 0x758   : > { %3731 = vadd.xlane.f32.xlu1 %v3730_v12  ;;  %7237 = vpow2.f32 %v3724_v26  ;;  %v3713_v37 = vsub.f32 %v8008_v24, %v3705_v35 }
 0x759   : > { %7239 = vpow2.f32 %v3726_v36 }
 0x75a   : > { %v7232_v25 = vpop.eup %7231  ;;  %v3728_v44 = vmul.f32 1.442695, %v3713_v37 }
 0x75b   : > { %v3736_v27 = vsel %vm379_vm2, %v7232_v25, 0.0  ;;  %v8090_v24 = vpop.permute.xlu0 %4577 }
 0x75c   : > { %3737 = vadd.xlane.f32.xlu1 %v3736_v27  ;;  %7241 = vpow2.f32 %v3728_v44 }
 0x75e   : > { %v8052_v28 = vpop.eup %7233 }
 0x75f   : > { %v8054_v6 = vpop.eup %7235  ;;  %v3742_v29 = vsel %vm379_vm2, %v8052_v28, 0.0 }
 0x760   : > { %3743 = vadd.xlane.f32.xlu1 %v3742_v29  ;;  %v3739_v8 = vsel %vm379_vm2, %v8054_v6, 0.0 }
 0x761   : > { %3740 = vadd.xlane.f32.xlu0 %v3739_v8 }
 0x762   : > { %v8060_v30 = vpop.eup %7237 }
 0x763   : > { %v3745_v31 = vsel %vm379_vm2, %v8060_v30, 0.0  ;;  %v8070_v45 = vpop.eup %7239 }
 0x764   : > { %v3748_v46 = vsel %vm379_vm2, %v8070_v45, 0.0 }
 0x765   : > { %3746 = vadd.xlane.f32.xlu0 %v3745_v31 }
 0x766   : > { %v8074_v48 = vpop.eup %7241 }
 0x767   : > { %v3751_v54 = vsel %vm379_vm2, %v8074_v48, 0.0 }
 0x771   : > { %4653 = vrot.lane.b32.xlu1 %v7520_v17, %s7400_s11 }
 0x77b   : > { %4575 = vrot.lane.b32.xlu0 %v7522_v18, %s7400_s11 }
 0x795   : > { %3749 = vadd.xlane.f32.xlu1 %v3748_v46 }
 0x79a   : > { %3752 = vadd.xlane.f32.xlu0 %v3751_v54 }
 0x7a6   : > { %4811 = vrot.lane.b32.xlu1 %v7526_v19, %s7399_s10 }
 0x7aa   : > { %4809 = vrot.lane.b32.xlu1 %v7526_v19, %s7400_s11 }
 0x7ae   : > { %4967 = vrot.lane.b32.xlu1 %v7532_v21, %s7399_s10 }
 0x7b0   : > { %4733 = vrot.lane.b32.xlu0 %v7528_v20, %s7399_s10 }
 0x7b2   : > { %4965 = vrot.lane.b32.xlu1 %v7532_v21, %s7400_s11 }
 0x7b4   : > { %4731 = vrot.lane.b32.xlu0 %v7528_v20, %s7400_s11 }
 0x7b8   : > { %4889 = vrot.lane.b32.xlu0 %v7534_v22, %s7399_s10 }
 0x7bc   : > { %v3735_v33 = vpop.xlane.xlu0 %3734  ;;  %4887 = vrot.lane.b32.xlu0 %v7534_v22, %s7400_s11  ;;  %s8516_s11 = scalar_lea.hbm %s8566_s5, %s6514_s6 }
 0x7bd   : > { %7243 = vrcp.f32 %v3735_v33 }
 0x7c7   : > { %v7244_v56 = vpop.eup %7243 }
 0x7c8   : > { %v3763_v58 = vmul.f32 %v7244_v56, %v8037_v47 }
 0x7ca   : > { %6909 = vmatmul.mubr.msk.f32.vlgmr.msra.gmra.mrb[54].mxu0 %vm379_vm2, %v3763_v58 }
 0x7cb   : > { %6917 = vmatpush3.msra.mxu0 %v8027_v39  ;;  %6918 = vmatprep.mubr.msk.f32.mxu0 %vm7390_vm1, %v7389_v14 }
 0x7cc   : > { %6926 = vmatprep.subr.mxu0 %v7389_v14 }
 0x7e5   : > { %v3732_v62 = vpop.xlane.xlu1 %3731 }
 0x7e6   : > { %7245 = vrcp.f32 %v3732_v62 }
 0x7e9   : > { %v3738_v0 = vpop.xlane.xlu1 %3737 }
 0x7ea   : > { %7247 = vrcp.f32 %v3738_v0 }
 0x7ed   : > { %v3744_v2 = vpop.xlane.xlu1 %3743 }
 0x7ee   : > { %7249 = vrcp.f32 %v3744_v2  ;;  %v3741_v3 = vpop.xlane.xlu0 %3740 }
 0x7ef   : > { %7251 = vrcp.f32 %v3741_v3 }
 0x7f0   : > { %v7246_v47 = vpop.eup %7245 }
 0x7f1   : > { %v3762_v4 = vmul.f32 %v7246_v47, %v7230_v23 }
 0x7f2   : > { %v3747_v5 = vpop.xlane.xlu0 %3746 }
 0x7f3   : > { %7253 = vrcp.f32 %v3747_v5  ;;  %6904 = vmatmul.mubr.msk.f32.vlgmr.msra.gmra.mrb[34].mxu1 %vm379_vm2, %v3762_v4 }
 0x7f4   : > { %v7248_v39 = vpop.eup %7247  ;;  %6912 = vmatpush3.msra.mxu1 %v8025_v38  ;;  %6913 = vmatprep.mubr.msk.f32.mxu1 %vm7390_vm1, %v7389_v14 }
 0x7f5   : > { %v3764_v7 = vmul.f32 %v7248_v39, %v7232_v25  ;;  %6921 = vmatprep.subr.mxu1 %v7389_v14 }
 0x7f6   : > { %v4576_v26 = vpop.permute.xlu0 %4575 }
 0x7f7   : > { %6914 = vmatmul.mubr.msk.f32.vlgmr.msra.gmra.mrb[36].mxu1 %vm379_vm2, %v3764_v7 }
 0x7f8   : > { %v7250_v10 = vpop.eup %7249  ;;  %6922 = vmatpush3.msra.mxu1 %v8041_v49  ;;  %6923 = vmatprep.mubr.msk.f32.mxu1 %vm7390_vm1, %v7389_v14 }
 0x7f9   : > { %v7252_v11 = vpop.eup %7251  ;;  %v3766_v13 = vmul.f32 %v7250_v10, %v8052_v28  ;;  %6931 = vmatprep.subr.mxu1 %v7389_v14 }
 0x7fa   : > { %v3765_v38 = vmul.f32 %v7252_v11, %v8054_v6 }
 0x7fb   : > { %6924 = vmatmul.mubr.msk.f32.vlgmr.msra.gmra.mrb[38].mxu1 %vm379_vm2, %v3766_v13 }
 0x7fc   : > { %6919 = vmatmul.mubr.msk.f32.vlgmr.msra.gmra.mrb[56].mxu0 %vm379_vm2, %v3765_v38  ;;  %6932 = vmatpush3.msra.mxu1 %v8043_v50 }
 0x7fd   : > { %v7254_v23 = vpop.eup %7253  ;;  %6927 = vmatpush3.msra.mxu0 %v8029_v40  ;;  %6928 = vmatprep.mubr.msk.f32.mxu0 %vm7390_vm1, %v7389_v14  ;;  %v4654_v40 = vpop.permute.xlu1 %4653 }
 0x7fe   : > { %v3767_v49 = vmul.f32 %v7254_v23, %v8060_v30  ;;  %6936 = vmatprep.subr.mxu0 %v7389_v14  ;;  %6933 = vmatprep.mubr.msk.f32.mxu1 %vm7390_vm1, %v7389_v14 }
 0x7ff   : > { %6941 = vmatprep.subr.mxu1 %v7389_v14 }
 0x800   : > { %6929 = vmatmul.mubr.msk.f32.vlgmr.msra.gmra.mrb[58].mxu0 %vm379_vm2, %v3767_v49 }
 0x801   : > { %6937 = vmatpush3.msra.mxu0 %v8031_v41  ;;  %6938 = vmatprep.mubr.msk.f32.mxu0 %vm7390_vm1, %v7389_v14 }
 0x802   : > { %6946 = vmatprep.subr.mxu0 %v7389_v14 }
 0x822   : > { %v3750_v50 = vpop.xlane.xlu1 %3749 }
 0x823   : > { %7255 = vrcp.f32 %v3750_v50 }
 0x826   : > { %v4812_v6 = vpop.permute.xlu1 %4811 }
 0x827   : > { %v3753_v12 = vpop.xlane.xlu0 %3752 }
 0x828   : > { %7257 = vrcp.f32 %v3753_v12 }
 0x82b   : > { %v4734_v27 = vpop.permute.xlu0 %4733 }
 0x82d   : > { %v7256_v25 = vpop.eup %7255 }
 0x82e   : > { %v3768_v28 = vmul.f32 %v7256_v25, %v8070_v45 }
 0x82f   : > { %v4732_v8 = vpop.permute.xlu0 %4731 }
 0x830   : > { %6934 = vmatmul.mubr.msk.f32.vlgmr.msra.gmra.mrb[40].mxu1 %vm379_vm2, %v3768_v28 }
 0x831   : > { %6942 = vmatpush3.xpose.msk.msra.mxu1 %vm379_vm2, %v8045_v51  ;;  %6943 = vmatprep.mubr.msk.f32.mxu1 %vm7390_vm1, %v7389_v14  ;;  %v4810_v51 = vpop.permute.xlu1 %4809 }
 0x832   : > { %v7258_v41 = vpop.eup %7257  ;;  %6951 = vmatprep.subr.mxu1 %v7389_v14 }
 0x833   : > { %v3769_v29 = vmul.f32 %v7258_v41, %v8074_v48 }
 0x834   : > { %6944 = vmatmul.mubr.msk.f32.vlgmr.msra.gmra.mrb[42].mxu1 %vm379_vm2, %v8047_v52  ;;  %v4890_v52 = vpop.permute.xlu0 %4889 }
 0x835   : > { %6939 = vmatmul.mubr.msk.f32.vlgmr.msra.gmra.mrb[60].mxu0 %vm379_vm2, %v3769_v29  ;;  %6952 = vmatpush3.xpose.msk.msra.mxu1 %vm379_vm2, %v8090_v24 }
 0x836   : > { %6947 = vmatpush3.xpose.msk.msra.mxu0 %vm379_vm2, %v8033_v42  ;;  %6948 = vmatprep.mubr.msk.f32.mxu0 %vm7390_vm1, %v7389_v14  ;;  %v4968_v42 = vpop.permute.xlu1 %4967 }
 0x837   : > { %6953 = vmatprep.mubr.msk.f32.mxu1 %vm7390_vm1, %v7389_v14  ;;  %6956 = vmatprep.subr.mxu0 %v7389_v14 }
 0x838   : > { %6961 = vmatprep.subr.mxu1 %v7389_v14  ;;  %6954 = vmatmul.mubr.msk.f32.vlgmr.msra.gmra.mrb[44].mxu1 %vm379_vm2, %v4576_v26 }
 0x839   : > { %6949 = vmatmul.mubr.msk.f32.vlgmr.msra.gmra.mrb[62].mxu0 %vm379_vm2, %v8035_v43  ;;  %6962 = vmatpush3.xpose.msk.msra.mxu1 %vm379_vm2, %v4734_v27  ;;  %v4888_v43 = vpop.permute.xlu0 %4887 }
 0x83a   : > { %6957 = vmatpush3.xpose.msk.msra.mxu0 %vm379_vm2, %v8102_v61  ;;  %6958 = vmatprep.mubr.msk.f32.mxu0 %vm7390_vm1, %v7389_v14  ;;  %v4966_v30 = vpop.permute.xlu1 %4965 }
 0x83b   : > { %6963 = vmatprep.mubr.msk.f32.mxu1 %vm7390_vm1, %v7389_v14  ;;  %6966 = vmatprep.subr.mxu0 %v7389_v14 }
 0x83c   : > { %6971 = vmatprep.subr.mxu1 %v7389_v14  ;;  %6964 = vmatmul.mubr.msk.f32.vlgmr.msra.gmra.mrb[46].mxu1 %vm379_vm2, %v4732_v8 }
 0x83d   : > { %6959 = vmatmul.mubr.msk.f32.vlgmr.msra.gmra.mrb[64].mxu0 %vm379_vm2, %v4654_v40  ;;  %6972 = vmatpush3.xpose.msk.msra.mxu1 %vm379_vm2, %v4890_v52 }
 0x83e   : > { %6967 = vmatpush3.xpose.msk.msra.mxu0 %vm379_vm2, %v4812_v6  ;;  %6968 = vmatprep.mubr.msk.f32.mxu0 %vm7390_vm1, %v7389_v14 }
 0x83f   : > { %6973 = vmatprep.mubr.msk.f32.mxu1 %vm7390_vm1, %v7389_v14  ;;  %6976 = vmatprep.subr.mxu0 %v7389_v14 }
 0x840   : > { %6974 = vmatmul.mubr.msk.f32.vlgmr.msra.gmra.mrb[48].mxu1 %vm379_vm2, %v4888_v43  ;;  %6981 = vmatprep.subr.mxu1 %v7389_v14 }
 0x841   : > { %6969 = vmatmul.mubr.msk.f32.vlgmr.msra.gmra.mrb[66].mxu0 %vm379_vm2, %v4810_v51  ;;  %6983 = vmatprep.mubr.msk.f32.mxu1 %vm7390_vm1, %v7389_v14 }
 0x842   : > { %6977 = vmatpush3.xpose.msk.msra.mxu0 %vm379_vm2, %v4968_v42  ;;  %6978 = vmatprep.mubr.msk.f32.mxu0 %vm7390_vm1, %v7389_v14 }
 0x843   : > { %6986 = vmatprep.subr.mxu0 %v7389_v14 }
 0x845   : > { %6979 = vmatmul.mubr.msk.f32.vlgmr.msra.gmra.mrb[68].mxu0 %vm379_vm2, %v4966_v30 }
 0x846   : > { %6988 = vmatprep.mubr.msk.f32.mxu0 %vm7390_vm1, %v7389_v14 }
 0x89d   : > { %v8186_v31 = vpop.f32.mrb[54].mxu0 }
 0x89e   : > { %v6910_v32 = vpop.f32.mrb[55].mxu0 }
 0x8c6   : > { %v8188_v34 = vpop.f32.mrb[34].mxu1 }
 0x8c7   : > { %v6905_v35 = vpop.f32.mrb[35].mxu1 }
 0x8ca   : > { %v8190_v36 = vpop.f32.mrb[36].mxu1 }
 0x8cb   : > { %v6915_v37 = vpop.f32.mrb[37].mxu1 }
 0x8ce   : > { %v8192_v44 = vpop.f32.mrb[38].mxu1 }
 0x8cf   : > { %v8194_v45 = vpop.f32.mrb[56].mxu0  ;;  %v6925_v46 = vpop.f32.mrb[39].mxu1 }
 0x8d0   : > { %v6920_v48 = vpop.f32.mrb[57].mxu0 }
 0x8d3   : > { %v8196_v54 = vpop.f32.mrb[58].mxu0 }
 0x8d4   : > { %v6930_v24 = vpop.f32.mrb[59].mxu0 }
 0x903   : > { %v8198_v33 = vpop.f32.mrb[40].mxu1 }
 0x904   : > { %v6935_v56 = vpop.f32.mrb[41].mxu1 }
 0x907   : > { %v4493_v58 = vpop.f32.mrb[42].mxu1 }
 0x908   : > { %v8200_v61 = vpop.f32.mrb[60].mxu0  ;;  %v6945_v62 = vpop.f32.mrb[43].mxu1  ;;  %v5043_v0 = vsel %vm379_vm2, %v4493_v58, -inf }
 0x909   : > { %v6940_v2 = vpop.f32.mrb[61].mxu0  ;;  %5044 = vmax.xlane.f32.xlu0 %v5043_v0 }
 0x90b   : > { %v4649_v3 = vpop.f32.mrb[44].mxu1 }
 0x90c   : > { %v4571_v47 = vpop.f32.mrb[62].mxu0  ;;  %v6955_v4 = vpop.f32.mrb[45].mxu1  ;;  %v5049_v5 = vsel %vm379_vm2, %v4649_v3, -inf }
 0x90d   : > { %v6950_v39 = vpop.f32.mrb[63].mxu0  ;;  %5050 = vmax.xlane.f32.xlu0 %v5049_v5  ;;  %v5046_v7 = vsel %vm379_vm2, %v4571_v47, -inf }
 0x90e   : > { %5047 = vmax.xlane.f32.xlu1 %v5046_v7 }
 0x90f   : > { %v4805_v10 = vpop.f32.mrb[46].mxu1 }
 0x910   : > { %v4727_v11 = vpop.f32.mrb[64].mxu0  ;;  %v6965_v13 = vpop.f32.mrb[47].mxu1  ;;  %v5055_v38 = vsel %vm379_vm2, %v4805_v10, -inf }
 0x911   : > { %v6960_v23 = vpop.f32.mrb[65].mxu0  ;;  %v5052_v49 = vsel %vm379_vm2, %v4727_v11, -inf }
 0x912   : > { %5056 = vmax.xlane.f32.xlu1 %v5055_v38  ;;  %5053 = vmax.xlane.f32.xlu0 %v5052_v49 }
 0x913   : > { %v4961_v40 = vpop.f32.mrb[48].mxu1 }
 0x914   : > { %v4883_v50 = vpop.f32.mrb[66].mxu0  ;;  %v6975_v26 = vpop.f32.mrb[49].mxu1  ;;  %v5061_v12 = vsel %vm379_vm2, %v4961_v40, -inf }
 0x915   : > { %v6970_v25 = vpop.f32.mrb[67].mxu0  ;;  %v5058_v27 = vsel %vm379_vm2, %v4883_v50, -inf }
 0x916   : > { %5062 = vmax.xlane.f32.xlu1 %v5061_v12  ;;  %5059 = vmax.xlane.f32.xlu0 %v5058_v27 }
 0x918   : > { %v5039_v28 = vpop.f32.mrb[68].mxu0 }
 0x919   : > { %v6980_v41 = vpop.f32.mrb[69].mxu0  ;;  %v5064_v6 = vsel %vm379_vm2, %v5039_v28, -inf }
 0x91a   : > { %5065 = vmax.xlane.f32.xlu0 %v5064_v6 }
 0x927   : > { %5131 = vrot.lane.b32.xlu1 %v7517_v16, %s7401_s12 }
 0x92b   : > { %5283 = vrot.lane.b32.xlu1 %v7522_v18, %s7401_s12 }
 0x92f   : > { %5359 = vrot.lane.b32.xlu1 %v7520_v17, %s7401_s12 }
 0x930   : > { %5207 = vrot.lane.b32.xlu0 %v7515_v15, %s7401_s12 }
 0x933   : > { %5511 = vrot.lane.b32.xlu1 %v7526_v19, %s7401_s12 }
 0x934   : > { %5435 = vrot.lane.b32.xlu0 %v7528_v20, %s7401_s12 }
 0x996   : > { %v5045_v29 = vpop.xlane.xlu0 %5044 }
 0x997   : > { %v5067_v8 = vsub.f32 %v4493_v58, %v5045_v29 }
 0x999   : > { %v5075_v51 = vmul.f32 1.442695, %v5067_v8 }
 0x99a   : > { %v5051_v52 = vpop.xlane.xlu0 %5050 }
 0x99b   : > { %7259 = vpow2.f32 %v5075_v51  ;;  %v5069_v16 = vsub.f32 %v4649_v3, %v5051_v52  ;;  %v5048_v42 = vpop.xlane.xlu1 %5047 }
 0x99c   : > { %v5068_v18 = vsub.f32 %v4571_v47, %v5048_v42 }
 0x99d   : > { %v5079_v43 = vmul.f32 1.442695, %v5069_v16 }
 0x99e   : > { %v5077_v30 = vmul.f32 1.442695, %v5068_v18 }
 0x99f   : > { %7261 = vpow2.f32 %v5079_v43  ;;  %v5057_v17 = vpop.xlane.xlu1 %5056  ;;  %v5054_v32 = vpop.xlane.xlu0 %5053 }
 0x9a0   : > { %7263 = vpow2.f32 %v5077_v30  ;;  %v5071_v15 = vsub.f32 %v4805_v10, %v5057_v17  ;;  %v5070_v35 = vsub.f32 %v4727_v11, %v5054_v32 }
 0x9a2   : > { %v5083_v19 = vmul.f32 1.442695, %v5071_v15  ;;  %v5081_v37 = vmul.f32 1.442695, %v5070_v35 }
 0x9a3   : > { %v5063_v46 = vpop.xlane.xlu1 %5062  ;;  %v5060_v20 = vpop.xlane.xlu0 %5059 }
 0x9a4   : > { %7265 = vpow2.f32 %v5083_v19  ;;  %v5073_v48 = vsub.f32 %v4961_v40, %v5063_v46  ;;  %v5072_v24 = vsub.f32 %v4883_v50, %v5060_v20 }
 0x9a5   : > { %v8222_v56 = vpop.eup %7259  ;;  %7267 = vpow2.f32 %v5081_v37 }
 0x9a6   : > { %v5087_v58 = vmul.f32 1.442695, %v5073_v48  ;;  %v5085_v62 = vmul.f32 1.442695, %v5072_v24  ;;  %v5091_v0 = vsel %vm379_vm2, %v8222_v56, 0.0 }
 0x9a7   : > { %v5132_v2 = vpop.permute.xlu1 %5131  ;;  %v5066_v3 = vpop.xlane.xlu0 %5065  ;;  %5092 = vadd.xlane.f32.xlu1 %v5091_v0 }
 0x9a8   : > { %7269 = vpow2.f32 %v5087_v58  ;;  %v5074_v47 = vsub.f32 %v5039_v28, %v5066_v3  ;;  %6982 = vmatpush3.msra.mxu1 %v5132_v2  ;;  %v5788_v3 = vld [vmem:[%s8563_s2] sm:$0xff] }
 0x9a9   : > { %v8226_v4 = vpop.eup %7261  ;;  %7271 = vpow2.f32 %v5085_v62  ;;  %6991 = vmatprep.subr.mxu1 %v7389_v14 }
 0x9aa   : > { %v8229_v5 = vpop.eup %7263  ;;  %v5089_v39 = vmul.f32 1.442695, %v5074_v47  ;;  %v5097_v7 = vsel %vm379_vm2, %v8226_v4, 0.0  ;;  %v5789_v47 = vld [vmem:[%s8563_s2 + $0x8] sm:$0xff] }
 0x9ab   : > { %v5208_v10 = vpop.permute.xlu0 %5207  ;;  %5098 = vadd.xlane.f32.xlu1 %v5097_v7  ;;  %v5094_v11 = vsel %vm379_vm2, %v8229_v5, 0.0 }
 0x9ac   : > { %7273 = vpow2.f32 %v5089_v39  ;;  %5095 = vadd.xlane.f32.xlu0 %v5094_v11  ;;  %6987 = vmatpush3.msra.mxu0 %v5208_v10  ;;  %v5791_v39 = vld [vmem:[%s8563_s2 + $0x18] sm:$0xff]  ;;  %v5792_v10 = vld [vmem:[%s8563_s2 + $0x20] sm:$0xff]  ;;  %v5793_v11 = vld [vmem:[%s8563_s2 + $0x28] sm:$0xff] }
 0x9ad   : > { %6996 = vmatprep.subr.mxu0 %v7389_v14 }
 0x9ae   : > { %v8236_v13 = vpop.eup %7265 }
 0x9af   : > { %v8238_v38 = vpop.eup %7267  ;;  %v5103_v23 = vsel %vm379_vm2, %v8236_v13, 0.0 }
 0x9b0   : > { %5104 = vadd.xlane.f32.xlu1 %v5103_v23  ;;  %v5100_v49 = vsel %vm379_vm2, %v8238_v38, 0.0  ;;  %v5795_v23 = vld [vmem:[%s8563_s2 + $0x38] sm:$0xff] }
 0x9b1   : > { %5101 = vadd.xlane.f32.xlu0 %v5100_v49 }
 0x9b2   : > { %v8244_v40 = vpop.eup %7269 }
 0x9b3   : > { %v8246_v50 = vpop.eup %7271  ;;  %v5109_v26 = vsel %vm379_vm2, %v8244_v40, 0.0 }
 0x9b4   : > { %5110 = vadd.xlane.f32.xlu1 %v5109_v26  ;;  %v5106_v12 = vsel %vm379_vm2, %v8246_v50, 0.0 }
 0x9b5   : > { %5107 = vadd.xlane.f32.xlu0 %v5106_v12  ;;  %v5798_v12 = vld [vmem:[%s8563_s2 + $0x50] sm:$0xff] }
 0x9b6   : > { %v8252_v25 = vpop.eup %7273 }
 0x9b7   : > { %v5112_v27 = vsel %vm379_vm2, %v8252_v25, 0.0 }
 0x9b9   : > { %5113 = vadd.xlane.f32.xlu0 %v5112_v27 }
 0x9c5   : > { %5663 = vrot.lane.b32.xlu1 %v7532_v21, %s7401_s12  ;;  %v5284_v21 = vpop.permute.xlu1 %5283 }
 0x9c9   : > { %3027 = vrot.lane.b32.xlu1 %v7988_v53, %s7402_s13 }
 0x9cd   : > { %4388 = vrot.lane.b32.xlu1 %v8186_v31, %s7403_s14 }
 0x9cf   : > { %5587 = vrot.lane.b32.xlu0 %v7534_v22, %s7401_s12  ;;  %v5360_v22 = vpop.permute.xlu1 %5359  ;;  %s7325_s12 = scalar_lea.vmem %s8518_s8, 128 }
 0x9d0   : > { %p7326_p11 = scmp.ne.s32.totalorder %s8518_s8, %s7325_s12 }
 0x9d1   : > { %3031 = vrot.lane.b32.xlu1 %v7996_v60, %s7402_s13 }
 0x9d2   : > { %p7327_p12 = pnand %p7326_p11, %p7475_p5 }
 0x9d3   : > { %3025 = vrot.lane.b32.xlu0 %v7990_v55, %s7402_s13  ;;  %v5512_v53 = vpop.permute.xlu1 %5511 }
 0x9d4   : > { %p7328_p13 = pneg %p7327_p12 }
 0x9d5   : > { %4392 = vrot.lane.b32.xlu1 %v8194_v45, %s7403_s14 }
 0x9d7   : > { %4386 = vrot.lane.b32.xlu0 %v8188_v34, %s7403_s14 }
 0x9d9   : > { %3035 = vrot.lane.b32.xlu1 %v7998_v63, %s7402_s13 }
 0x9db   : > { %3029 = vrot.lane.b32.xlu0 %v7992_v57, %s7402_s13  ;;  %v5436_v57 = vpop.permute.xlu0 %5435 }
 0x9dd   : > { %4396 = vrot.lane.b32.xlu1 %v8196_v54, %s7403_s14 }
 0x9df   : > { %4390 = vrot.lane.b32.xlu0 %v8190_v36, %s7403_s14 }
 0x9e1   : > { %3039 = vrot.lane.b32.xlu1 %v8000_v1, %s7402_s13 }
 0x9e3   : > { %3033 = vrot.lane.b32.xlu0 %v7994_v59, %s7402_s13 }
 0x9e5   : > { %4400 = vrot.lane.b32.xlu1 %v8200_v61, %s7403_s14 }
 0x9e7   : > { %4394 = vrot.lane.b32.xlu0 %v8192_v44, %s7403_s14 }
 0x9eb   : > { %3037 = vrot.lane.b32.xlu0 %v8005_v9, %s7402_s13  ;;  %s7406_s13 = smov [#allocation3]  }
 0x9ef   : > { %4398 = vrot.lane.b32.xlu0 %v8198_v33, %s7403_s14  ;;  %s7329_s14 = sshll.u32 %s7406_s13, 4  ;;  %s7330_s14 = int_to_ptr.vmem [resolvable:$false] %s7329_s14 }
 0x9f0   : > { %p7332_p0 = scmp.lt.s32.totalorder %s8518_s8, %s7330_s14 }
 0xa34   : > { %v5093_v55 = vpop.xlane.xlu1 %5092 }
 0xa35   : > { %7275 = vrcp.f32 %v5093_v55  ;;  %v5802_v55 = vld [vmem:[%s8563_s2 + $0x70] sm:$0xff] }
 0xa38   : > { %v5099_v60 = vpop.xlane.xlu1 %5098 }
 0xa39   : > { %7277 = vrcp.f32 %v5099_v60  ;;  %v5096_v63 = vpop.xlane.xlu0 %5095 }
 0xa3a   : > { %7279 = vrcp.f32 %v5096_v63 }
 0xa3d   : > { %v5105_v1 = vpop.xlane.xlu1 %5104 }
 0xa3e   : > { %7281 = vrcp.f32 %v5105_v1  ;;  %v5102_v59 = vpop.xlane.xlu0 %5101 }
 0xa3f   : > { %v7276_v31 = vpop.eup %7275  ;;  %7283 = vrcp.f32 %v5102_v59 }
 0xa40   : > { %v5123_v34 = vmul.f32 %v7276_v31, %v8222_v56 }
 0xa41   : > { %v5111_v9 = vpop.xlane.xlu1 %5110 }
 0xa42   : > { %7285 = vrcp.f32 %v5111_v9  ;;  %v5108_v36 = vpop.xlane.xlu0 %5107  ;;  %6984 = vmatmul.mubr.msk.f32.vlgmr.msra.gmra.mrb[50].mxu1 %vm379_vm2, %v5123_v34 }
 0xa43   : > { %v7278_v44 = vpop.eup %7277  ;;  %7287 = vrcp.f32 %v5108_v36  ;;  %6992 = vmatpush3.msra.mxu1 %v5284_v21  ;;  %6993 = vmatprep.mubr.msk.f32.mxu1 %vm7390_vm1, %v7389_v14  ;;  %v5800_v21 = vld [vmem:[%s8563_s2 + $0x60] sm:$0xff] }
 0xa44   : > { %v7280_v45 = vpop.eup %7279  ;;  %v5125_v54 = vmul.f32 %v7278_v44, %v8226_v4  ;;  %7001 = vmatprep.subr.mxu1 %v7389_v14  ;;  %v5790_v4 = vld [vmem:[%s8563_s2 + $0x10] sm:$0xff] }
 0xa45   : > { %v5124_v33 = vmul.f32 %v7280_v45, %v8229_v5  ;;  %v5664_v61 = vpop.permute.xlu1 %5663  ;;  %v7073_v5 = vpack.c.bf16 %v5789_v47, %v5788_v3  ;;  %v7077_v7 = vpack.c.bf16 %v5791_v39, %v5790_v4 }
 0xa46   : > { %v5114_v28 = vpop.xlane.xlu0 %5113  ;;  %6994 = vmatmul.mubr.msk.f32.vlgmr.msra.gmra.mrb[52].mxu1 %vm379_vm2, %v5125_v54 }
 0xa47   : > { %7289 = vrcp.f32 %v5114_v28  ;;  %6989 = vmatmul.mubr.msk.f32.vlgmr.msra.gmra.mrb[70].mxu0 %vm379_vm2, %v5124_v33  ;;  %7002 = vmatpush3.msra.mxu1 %v5436_v57  ;;  %v5803_v57 = vld [vmem:[%s8563_s2 + $0x78] sm:$0xff] }
 0xa48   : > { %v7282_v41 = vpop.eup %7281  ;;  %6997 = vmatpush3.msra.mxu0 %v5360_v22  ;;  %6998 = vmatprep.mubr.msk.f32.mxu0 %vm7390_vm1, %v7389_v14  ;;  %v5801_v22 = vld [vmem:[%s8563_s2 + $0x68] sm:$0xff]  ;;  %v7101_v60 = vpack.c.bf16 %v5803_v57, %v5802_v55 }
 0xa49   : > { %v7284_v6 = vpop.eup %7283  ;;  %v5127_v29 = vmul.f32 %v7282_v41, %v8236_v13  ;;  %v3028_v8 = vpop.permute.xlu1 %3027  ;;  %7003 = vmatprep.mubr.msk.f32.mxu1 %vm7390_vm1, %v7389_v14  ;;  %7006 = vmatprep.subr.mxu0 %v7389_v14  ;;  %v7081_v13 = vpack.c.bf16 %v5793_v11, %v5792_v10 }
 0xa4a   : > { %v5126_v51 = vmul.f32 %v7284_v6, %v8238_v38  ;;  %3051 = vst.msk [vmem:[#allocation2 + $0x8] sm:$0xff] %vm3049_vm4, %v3028_v8  ;;  %v5588_v52 = vpop.permute.xlu0 %5587  ;;  %7011 = vmatprep.subr.mxu1 %v7389_v14  ;;  %v5794_v38 = vld [vmem:[%s8563_s2 + $0x30] sm:$0xff] }
 0xa4b   : > { %7004 = vmatmul.mubr.msk.f32.vlgmr.msra.gmra.mrb[54].mxu1 %vm379_vm2, %v5127_v29  ;;  %v7085_v49 = vpack.c.bf16 %v5795_v23, %v5794_v38 }
 0xa4c   : > { %v7286_v16 = vpop.eup %7285  ;;  %6999 = vmatmul.mubr.msk.f32.vlgmr.msra.gmra.mrb[72].mxu0 %vm379_vm2, %v5126_v51  ;;  %7012 = vmatpush3.msra.mxu1 %v5588_v52 }
 0xa4d   : > { %v7288_v42 = vpop.eup %7287  ;;  %v5129_v18 = vmul.f32 %v7286_v16, %v8244_v40  ;;  %7007 = vmatpush3.msra.mxu0 %v5512_v53  ;;  %v4389_v43 = vpop.permute.xlu1 %4388  ;;  %7008 = vmatprep.mubr.msk.f32.mxu0 %vm7390_vm1, %v7389_v14  ;;  %v5796_v40 = vld [vmem:[%s8563_s2 + $0x40] sm:$0xff]  ;;  %v7097_v53 = vpack.c.bf16 %v5801_v22, %v5800_v21 }
 0xa4e   : > { %v5128_v30 = vmul.f32 %v7288_v42, %v8246_v50  ;;  %4412 = vst.msk [vmem:[#allocation2 + $0x8] sm:$0xff] %vm4410_vm5, %v4389_v43  ;;  %v3026_v17 = vpop.permute.xlu0 %3025  ;;  %7013 = vmatprep.mubr.msk.f32.mxu1 %vm7390_vm1, %v7389_v14  ;;  %7016 = vmatprep.subr.mxu0 %v7389_v14  ;;  %v5797_v50 = vld [vmem:[%s8563_s2 + $0x48] sm:$0xff] }
 0xa4f   : > { %3050 = vst.msk [vmem:[#allocation2] sm:$0xff] %vm3049_vm4, %v3026_v17  ;;  %7014 = vmatmul.mubr.msk.f32.vlgmr.msra.gmra.mrb[56].mxu1 %vm379_vm2, %v5129_v18  ;;  %7074 = vmatprep.subr.bf16.mxu1 %v7073_v5  ;;  %v7089_v26 = vpack.c.bf16 %v5797_v50, %v5796_v40 }
 0xa50   : > { %7009 = vmatmul.mubr.msk.f32.vlgmr.msra.gmra.mrb[74].mxu0 %vm379_vm2, %v5128_v30  ;;  %7076 = vmatpush3.bf16.msra.mxu1 %v7073_v5 }
 0xa51   : > { %v7290_v32 = vpop.eup %7289  ;;  %7017 = vmatpush3.msra.mxu0 %v5664_v61  ;;  %v3032_v15 = vpop.permute.xlu1 %3031  ;;  %7018 = vmatprep.mubr.msk.f32.mxu0 %vm7390_vm1, %v7389_v14 }
 0xa52   : > { %v5130_v35 = vmul.f32 %v7290_v32, %v8252_v25  ;;  %3053 = vst.msk [vmem:[#allocation2 + $0x18] sm:$0xff] %vm3049_vm4, %v3032_v15  ;;  %v4387_v19 = vpop.permute.xlu0 %4386  ;;  %7078 = vmatprep.subr.bf16.mxu1 %v7077_v7  ;;  %v5799_v25 = vld [vmem:[%s8563_s2 + $0x58] sm:$0xff] }
 0xa53   : > { %4411 = vst.msk [vmem:[#allocation2] sm:$0xff] %vm4410_vm5, %v4387_v19  ;;  %v7093_v27 = vpack.c.bf16 %v5799_v25, %v5798_v12 }
 0xa54   : > { %7019 = vmatmul.mubr.msk.f32.vlgmr.msra.gmra.mrb[76].mxu0 %vm379_vm2, %v5130_v35  ;;  %7080 = vmatpush3.bf16.msra.mxu1 %v7077_v7  ;;  %v6512_v7 = vld [vmem:[%s8565_s4] ss:$0 sm:$0xff] }
 0xa55   : > { %v4393_v37 = vpop.permute.xlu1 %4392  ;;  %7082 = vmatprep.subr.bf16.mxu1 %v7081_v13 }
 0xa56   : > { %4414 = vst.msk [vmem:[#allocation2 + $0x18] sm:$0xff] %vm4410_vm5, %v4393_v37  ;;  %v3030_v46 = vpop.permute.xlu0 %3029 }
 0xa57   : > { %3052 = vst.msk [vmem:[#allocation2 + $0x10] sm:$0xff] %vm3049_vm4, %v3030_v46 }
 0xa58   : > { %7084 = vmatpush3.bf16.msra.mxu1 %v7081_v13 }
 0xa59   : > { %v3036_v20 = vpop.permute.xlu1 %3035  ;;  %7086 = vmatprep.subr.bf16.mxu1 %v7085_v49 }
 0xa5a   : > { %3055 = vst.msk [vmem:[#allocation2 + $0x28] sm:$0xff] %vm3049_vm4, %v3036_v20  ;;  %v4391_v48 = vpop.permute.xlu0 %4390 }
 0xa5b   : > { %4413 = vst.msk [vmem:[#allocation2 + $0x10] sm:$0xff] %vm4410_vm5, %v4391_v48  ;;  %v6511_v48 = vld [vmem:[%s8564_s3] ss:$0 sm:$0xff] }
 0xa5c   : > { %7088 = vmatpush3.bf16.msra.mxu1 %v7085_v49 }
 0xa5d   : > { %v4397_v14 = vpop.permute.xlu1 %4396  ;;  %7090 = vmatprep.subr.bf16.mxu1 %v7089_v26 }
 0xa5e   : > { %4416 = vst.msk [vmem:[#allocation2 + $0x28] sm:$0xff] %vm4410_vm5, %v4397_v14  ;;  %v3034_v24 = vpop.permute.xlu0 %3033 }
 0xa5f   : > { %3054 = vst.msk [vmem:[#allocation2 + $0x20] sm:$0xff] %vm3049_vm4, %v3034_v24 }
 0xa60   : > { %7092 = vmatpush3.bf16.msra.mxu1 %v7089_v26 }
 0xa61   : > { %v3040_v56 = vpop.permute.xlu1 %3039  ;;  %7094 = vmatprep.subr.bf16.mxu1 %v7093_v27 }
 0xa62   : > { %3057 = vst.msk [vmem:[#allocation2 + $0x38] sm:$0xff] %vm3049_vm4, %v3040_v56  ;;  %v4395_v58 = vpop.permute.xlu0 %4394 }
 0xa63   : > { %4415 = vst.msk [vmem:[#allocation2 + $0x20] sm:$0xff] %vm4410_vm5, %v4395_v58 }
 0xa64   : > { %7096 = vmatpush3.bf16.msra.mxu1 %v7093_v27 }
 0xa65   : > { %v4401_v62 = vpop.permute.xlu1 %4400  ;;  %7098 = vmatprep.subr.bf16.mxu1 %v7097_v53 }
 0xa66   : > { %4418 = vst.msk [vmem:[#allocation2 + $0x38] sm:$0xff] %vm4410_vm5, %v4401_v62  ;;  %v3038_v0 = vpop.permute.xlu0 %3037 }
 0xa67   : > { %3056 = vst.msk [vmem:[#allocation2 + $0x30] sm:$0xff] %vm3049_vm4, %v3038_v0 }
 0xa68   : > { %7100 = vmatpush3.bf16.msra.mxu1 %v7097_v53 }
 0xa69   : > { %7102 = vmatprep.subr.bf16.mxu1 %v7101_v60 }
 0xa6a   : > { %v4399_v2 = vpop.permute.xlu0 %4398 }
 0xa6b   : > { %4417 = vst.msk [vmem:[#allocation2 + $0x30] sm:$0xff] %vm4410_vm5, %v4399_v2 }
 0xa6c   : > { %7104 = vmatpush3.bf16.msra.mxu1 %v7101_v60 }
 0xb15   : > { %v5203_v63 = vpop.f32.mrb[50].mxu1 }
 0xb16   : > { %v6985_v1 = vpop.f32.mrb[51].mxu1  ;;  %5747 = vrot.lane.b32.xlu0 %v5203_v63, %s7404_s15 }
 0xb19   : > { %v5355_v59 = vpop.f32.mrb[52].mxu1 }
 0xb1a   : > { %v5279_v31 = vpop.f32.mrb[70].mxu0  ;;  %v6995_v34 = vpop.f32.mrb[53].mxu1  ;;  %5751 = vrot.lane.b32.xlu0 %v5355_v59, %s7404_s15 }
 0xb1b   : > { %5749 = vrot.lane.b32.xlu1 %v5279_v31, %s7404_s15  ;;  %v6990_v9 = vpop.f32.mrb[71].mxu0 }
 0xb1e   : > { %v5507_v36 = vpop.f32.mrb[54].mxu1 }
 0xb1f   : > { %v5431_v44 = vpop.f32.mrb[72].mxu0  ;;  %5755 = vrot.lane.b32.xlu0 %v5507_v36, %s7404_s15  ;;  %v7005_v45 = vpop.f32.mrb[55].mxu1 }
 0xb20   : > { %5753 = vrot.lane.b32.xlu1 %v5431_v44, %s7404_s15  ;;  %v7000_v54 = vpop.f32.mrb[73].mxu0 }
 0xb22   : > { %v5659_v33 = vpop.f32.mrb[56].mxu1 }
 0xb23   : > { %v5583_v61 = vpop.f32.mrb[74].mxu0  ;;  %5759 = vrot.lane.b32.xlu0 %v5659_v33, %s7404_s15  ;;  %v7015_v28 = vpop.f32.mrb[57].mxu1  ;;  %v5972_v33 = vlaneseq }
 0xb24   : > { %5757 = vrot.lane.b32.xlu1 %v5583_v61, %s7404_s15  ;;  %v7010_v41 = vpop.f32.mrb[75].mxu0 }
 0xb25   : > { %v5973_v61 = vand.u32 127, %v5972_v33  ;;  %v8418_v28 = vshrl.u32 %v5972_v33, 7 }
 0xb27   : > { %v5735_v6 = vpop.f32.mrb[76].mxu0 }
 0xb28   : > { %5761 = vrot.lane.b32.xlu1 %v5735_v6, %s7404_s15  ;;  %v7020_v29 = vpop.f32.mrb[77].mxu0  ;;  %v8421_v6 = vsub.s32 %v5973_v61, %v8418_v28  ;;  %s7331_s15 = scalar_lea.vmem %s7330_s14, 256 }
 0xb29   : > { %p7333_p1 = scmp.lt.s32.totalorder %s7331_s15, %s7325_s12 }
 0xb2b   : > { %p7334_p2 = por %p7333_p1, %p7332_p0 }
 0xb2d   : > { %p7335_p3 = pnand %p7334_p2, %p7328_p13 }
 0xb88   : > { %v5748_v8 = vpop.permute.xlu0 %5747 }
 0xb89   : > { %5772 = vst.msk [vmem:[#allocation2] sm:$0xff] %vm5771_vm6, %v5748_v8 }
 0xb8c   : > { %v5752_v51 = vpop.permute.xlu0 %5751 }
 0xb8d   : > { %5774 = vst.msk [vmem:[#allocation2 + $0x10] sm:$0xff] %vm5771_vm6, %v5752_v51  ;;  %v5750_v52 = vpop.permute.xlu1 %5749 }
 0xb8e   : > { %5773 = vst.msk [vmem:[#allocation2 + $0x8] sm:$0xff] %vm5771_vm6, %v5750_v52 }
 0xb90   : > { %v8375_v16 = vld [vmem:[#allocation2] sm:$0xff] }
 0xb91   : > { %v5756_v42 = vpop.permute.xlu0 %5755  ;;  %7053 = vmatprep.mubr.f32.mxu1 %v8375_v16 }
 0xb92   : > { %5776 = vst.msk [vmem:[#allocation2 + $0x20] sm:$0xff] %vm5771_vm6, %v5756_v42  ;;  %v5754_v18 = vpop.permute.xlu1 %5753 }
 0xb93   : > { %5775 = vst.msk [vmem:[#allocation2 + $0x18] sm:$0xff] %vm5771_vm6, %v5754_v18 }
 0xb94   : > { %v8380_v43 = vld [vmem:[#allocation2 + $0x10] sm:$0xff] }
 0xb95   : > { %v5760_v30 = vpop.permute.xlu0 %5759  ;;  %v8382_v17 = vld [vmem:[#allocation2 + $0x8] sm:$0xff] }
 0xb96   : > { %5778 = vst.msk [vmem:[#allocation2 + $0x30] sm:$0xff] %vm5771_vm6, %v5760_v30  ;;  %v5758_v32 = vpop.permute.xlu1 %5757  ;;  %7054 = vmatmul.mubr.f32.vlgmr.msra.gmra.mrb[58].mxu1 %v8382_v17 }
 0xb97   : > { %5777 = vst.msk [vmem:[#allocation2 + $0x28] sm:$0xff] %vm5771_vm6, %v5758_v32  ;;  %7056 = vmatprep.mubr.f32.mxu1 %v8380_v43 }
 0xb99   : > { %v8388_v15 = vld [vmem:[#allocation2 + $0x20] sm:$0xff] }
 0xb9a   : > { %v5762_v35 = vpop.permute.xlu1 %5761  ;;  %v8390_v19 = vld [vmem:[#allocation2 + $0x18] sm:$0xff] }
 0xb9b   : > { %5779 = vst.msk [vmem:[#allocation2 + $0x38] sm:$0xff] %vm5771_vm6, %v5762_v35  ;;  %7057 = vmatmul.mubr.f32.gmra.mrb[60].mxu1 %v8390_v19 }
 0xb9c   : > { %7059 = vmatprep.mubr.f32.mxu1 %v8388_v15 }
 0xb9d   : > { %v8395_v37 = vld [vmem:[#allocation2 + $0x30] sm:$0xff] }
 0xb9e   : > { %v8397_v46 = vld [vmem:[#allocation2 + $0x28] sm:$0xff] }
 0xb9f   : > { %7060 = vmatmul.mubr.f32.gmra.mrb[62].mxu1 %v8397_v46 }
 0xba0   : > { %7062 = vmatprep.mubr.f32.mxu1 %v8395_v37 }
 0xba2   : > { %v8401_v20 = vld [vmem:[#allocation2 + $0x38] sm:$0xff] }
 0xba3   : > { %7063 = vmatmul.mubr.f32.gmra.mrb[64].mxu1 %v8401_v20 }
 0xc69   : > { %v7055_v14 = vpop.f32.mrb[58].mxu1 }
 0xc6a   : > { %v5883_v24 = vadd.f32 %v7055_v14, %v6511_v48  ;;  %v5877_v56 = vpop.f32.mrb[59].mxu1 }
 0xc6b   : > { %v5878_v58 = vadd.f32 %v6511_v48, %v5877_v56 }
 0xc6c   : > { %7291 = vtanh.f32 %v5883_v24 }
 0xc6d   : > { %7293 = vtanh.f32 %v5878_v58 }
 0xc6e   : > { %v7058_v62 = vpop.f32.mrb[60].mxu1 }
 0xc6f   : > { %v5893_v0 = vadd.f32 %v7058_v62, %v6511_v48  ;;  %v5887_v2 = vpop.f32.mrb[61].mxu1 }
 0xc70   : > { %v5888_v3 = vadd.f32 %v6511_v48, %v5887_v2 }
 0xc71   : > { %7295 = vtanh.f32 %v5893_v0 }
 0xc72   : > { %7297 = vtanh.f32 %v5888_v3  ;;  %v7061_v47 = vpop.f32.mrb[62].mxu1 }
 0xc73   : > { %v5903_v4 = vadd.f32 %v7061_v47, %v6511_v48  ;;  %v5897_v5 = vpop.f32.mrb[63].mxu1 }
 0xc74   : > { %v5898_v39 = vadd.f32 %v6511_v48, %v5897_v5 }
 0xc75   : > { %7299 = vtanh.f32 %v5903_v4 }
 0xc76   : > { %v7292_v10 = vpop.eup %7291  ;;  %7301 = vtanh.f32 %v5898_v39  ;;  %v7064_v11 = vpop.f32.mrb[64].mxu1 }
 0xc77   : > { %v7294_v13 = vpop.eup %7293  ;;  %v5913_v38 = vadd.f32 %v7064_v11, %v6511_v48  ;;  %v5907_v23 = vpop.f32.mrb[65].mxu1  ;;  %v5932_v49 = vmul.f32 %v7292_v10, %v6512_v7  ;;  %v7405_v10 = vmov 0   ;;  %v6027_v11 = vsub.s32 0, %v8418_v28 }
 0xc78   : > { %v5908_v40 = vadd.f32 %v6511_v48, %v5907_v23  ;;  %v5931_v50 = vmul.f32 %v7294_v13, %v6512_v7  ;;  %7162 = vset.pattern.permute.xlu1 %v7405_v10  ;;  %7161 = vset.pattern.permute.xlu0 %v7405_v10  ;;  %v6031_v13 = vsub.s32 1, %v8418_v28  ;;  %v6039_v23 = vsub.s32 3, %v8418_v28 }
 0xc79   : > { %7303 = vtanh.f32 %v5913_v38  ;;  %v5943_v26 = vsel %vm5939_vm7, %v5932_v49, 0.0  ;;  %v6035_v38 = vsub.s32 2, %v8418_v28 }
 0xc7a   : > { %7305 = vtanh.f32 %v5908_v40  ;;  %5944 = vadd.xlane.f32.xlu1 %v5943_v26  ;;  %v5940_v12 = vsel %vm5939_vm7, %v5931_v50, 0.0 }
 0xc7b   : > { %v7296_v25 = vpop.eup %7295  ;;  %5941 = vadd.xlane.f32.xlu0 %v5940_v12 }
 0xc7c   : > { %v7298_v27 = vpop.eup %7297  ;;  %v5934_v21 = vmul.f32 %v7296_v25, %v6512_v7 }
 0xc7d   : > { %v5933_v53 = vmul.f32 %v7298_v27, %v6512_v7  ;;  %v6043_v27 = vsub.s32 4, %v8418_v28 }
 0xc7e   : > { %v5949_v22 = vsel %vm5939_vm7, %v5934_v21, 0.0 }
 0xc7f   : > { %v7300_v55 = vpop.eup %7299  ;;  %5950 = vadd.xlane.f32.xlu0 %v5949_v22  ;;  %v5946_v63 = vsel %vm5939_vm7, %v5933_v53, 0.0 }
 0xc80   : > { %v7302_v57 = vpop.eup %7301  ;;  %v5936_v1 = vmul.f32 %v7300_v55, %v6512_v7 }
 0xc81   : > { %v5935_v60 = vmul.f32 %v7302_v57, %v6512_v7  ;;  %v6047_v57 = vsub.s32 5, %v8418_v28 }
 0xc82   : > { %v5955_v36 = vsel %vm5939_vm7, %v5936_v1, 0.0 }
 0xc83   : > { %v7304_v59 = vpop.eup %7303  ;;  %5947 = vadd.xlane.f32.xlu0 %v5946_v63  ;;  %v5952_v31 = vsel %vm5939_vm7, %v5935_v60, 0.0 }
 0xc84   : > { %v7306_v34 = vpop.eup %7305  ;;  %5953 = vadd.xlane.f32.xlu1 %v5952_v31  ;;  %v5938_v44 = vmul.f32 %v7304_v59, %v6512_v7  ;;  %v6051_v59 = vsub.s32 6, %v8418_v28 }
 0xc85   : > { %v5937_v9 = vmul.f32 %v7306_v34, %v6512_v7 }
 0xc86   : > { %v5961_v54 = vsel %vm5939_vm7, %v5938_v44, 0.0 }
 0xc87   : > { %5956 = vadd.xlane.f32.xlu0 %v5955_v36  ;;  %v5958_v45 = vsel %vm5939_vm7, %v5937_v9, 0.0  ;;  %v6055_v36 = vsub.s32 7, %v8418_v28 }
 0xc88   : > { %5959 = vadd.xlane.f32.xlu1 %v5958_v45 }
 0xc8b   : > { %5962 = vadd.xlane.f32.xlu0 %v5961_v54 }
 0xd07   : > { %v5945_v29 = vpop.xlane.xlu1 %5944 }
 0xd08   : > { %v5942_v41 = vpop.xlane.xlu0 %5941  ;;  %v5981_v51 = vrot.slane %v5945_v29, %v8421_v6 }
 0xd09   : > { %v5977_v52 = vrot.slane %v5942_v41, %v8421_v6 }
 0xd0b   : > { %v6007_v32 = vsel %vm6006_vm8, %v5981_v51, %v5977_v52 }
 0xd0c   : > { %v5951_v8 = vpop.xlane.xlu0 %5950 }
 0xd0d   : > { %v5989_v35 = vrot.slane %v5951_v8, %v8421_v6 }
 0xd10   : > { %v5948_v42 = vpop.xlane.xlu0 %5947 }
 0xd11   : > { %v5985_v18 = vrot.slane %v5948_v42, %v8421_v6  ;;  %v5954_v30 = vpop.xlane.xlu1 %5953 }
 0xd12   : > { %v5993_v14 = vrot.slane %v5954_v30, %v8421_v6 }
 0xd13   : > { %v6009_v48 = vsel %vm6008_vm9, %v5985_v18, %v6007_v32 }
 0xd14   : > { %v6011_v24 = vsel %vm6010_vm10, %v5989_v35, %v6009_v48  ;;  %v5957_v56 = vpop.xlane.xlu0 %5956 }
 0xd15   : > { %v6013_v58 = vsel %vm6012_vm11, %v5993_v14, %v6011_v24  ;;  %v5997_v62 = vrot.slane %v5957_v56, %v8421_v6  ;;  %v5960_v0 = vpop.xlane.xlu1 %5959 }
 0xd16   : > { %v6001_v2 = vrot.slane %v5960_v0, %v8421_v6 }
 0xd17   : > { %v6015_v3 = vsel %vm6014_vm12, %v5997_v62, %v6013_v58 }
 0xd18   : > { %v5963_v47 = vpop.xlane.xlu0 %5962  ;;  %v6017_v5 = vsel %vm6016_vm13, %v6001_v2, %v6015_v3 }
 0xd19   : > { %v6005_v4 = vrot.slane %v5963_v47, %v8421_v6 }
 0xd1b   : > { %v6019_v39 = vsel %vm6018_vm14, %v6005_v4, %v6017_v5 }
 0xd1c   : > { %v6021_v7 = vsel %vm379_vm2, %v6019_v39, -inf }
 0xd1d   : > { %6022 = vmax.xlane.f32.xlu1 %v6021_v7 }
 0xdaa   : > { %v6023_v49 = vpop.xlane.xlu1 %6022 }
 0xdab   : > { %v6028_v40 = vrot.slane %v6023_v49, %v6027_v11  ;;  %v6032_v50 = vrot.slane %v6023_v49, %v6031_v13  ;;  %v6036_v26 = vrot.slane %v6023_v49, %v6035_v38  ;;  %v6040_v21 = vrot.slane %v6023_v49, %v6039_v23 }
 0xdac   : > { %v6044_v60 = vrot.slane %v6023_v49, %v6043_v27  ;;  %v6048_v31 = vrot.slane %v6023_v49, %v6047_v57  ;;  %v6052_v44 = vrot.slane %v6023_v49, %v6051_v59 }
 0xdad   : > { %v6065_v12 = vsub.f32 %v5942_v41, %v6028_v40  ;;  %v6066_v25 = vsub.f32 %v5945_v29, %v6032_v50  ;;  %v6067_v22 = vsub.f32 %v5948_v42, %v6036_v26  ;;  %v6068_v63 = vsub.f32 %v5951_v8, %v6040_v21 }
 0xdae   : > { %v6069_v34 = vsub.f32 %v5954_v30, %v6044_v60  ;;  %v6070_v45 = vsub.f32 %v5957_v56, %v6048_v31  ;;  %v6056_v41 = vrot.slane %v6023_v49, %v6055_v36  ;;  %v6071_v29 = vsub.f32 %v5960_v0, %v6052_v44 }
 0xdaf   : > { %v6073_v53 = vmul.f32 1.442695, %v6065_v12  ;;  %v6075_v55 = vmul.f32 1.442695, %v6066_v25  ;;  %v6077_v1 = vmul.f32 1.442695, %v6067_v22 }
 0xdb0   : > { %v6079_v9 = vmul.f32 1.442695, %v6068_v63  ;;  %v6081_v54 = vmul.f32 1.442695, %v6069_v34  ;;  %v6083_v8 = vmul.f32 1.442695, %v6070_v45  ;;  %v6072_v52 = vsub.f32 %v5963_v47, %v6056_v41 }
 0xdb1   : > { %7307 = vpow2.f32 %v6073_v53  ;;  %v6085_v42 = vmul.f32 1.442695, %v6071_v29 }
 0xdb2   : > { %7309 = vpow2.f32 %v6075_v55  ;;  %v6087_v30 = vmul.f32 1.442695, %v6072_v52 }
 0xdb3   : > { %7311 = vpow2.f32 %v6077_v1 }
 0xdb4   : > { %7313 = vpow2.f32 %v6079_v9 }
 0xdb5   : > { %7315 = vpow2.f32 %v6081_v54 }
 0xdb6   : > { %7317 = vpow2.f32 %v6083_v8 }
 0xdb7   : > { %7319 = vpow2.f32 %v6085_v42 }
 0xdb8   : > { %7321 = vpow2.f32 %v6087_v30 }
 0xdbb   : > { %v7308_v33 = vpop.eup %7307 }
 0xdbc   : > { %v7310_v61 = vpop.eup %7309  ;;  %6098 = vperm.xlu0 %7161, %v7308_v33  }
 0xdbd   : > { %6101 = vperm.xlu1 %7162, %v7310_v61   ;;  %v7312_v51 = vpop.eup %7311 }
 0xdbe   : > { %v7314_v18 = vpop.eup %7313 }
 0xdbf   : > { %v7316_v32 = vpop.eup %7315 }
 0xdc0   : > { %v7318_v35 = vpop.eup %7317 }
 0xdc1   : > { %6104 = vperm.xlu1 %7162, %v7312_v51   ;;  %v7320_v48 = vpop.eup %7319 }
 0xdc2   : > { %v7322_v14 = vpop.eup %7321 }
 0xdc5   : > { %6107 = vperm.xlu1 %7162, %v7314_v18  }
 0xdc9   : > { %6110 = vperm.xlu1 %7162, %v7316_v32  }
 0xdcd   : > { %6113 = vperm.xlu1 %7162, %v7318_v35  }
 0xdd1   : > { %6116 = vperm.xlu1 %7162, %v7320_v48  }
 0xdd5   : > { %6119 = vperm.xlu1 %7162, %v7322_v14  }
 0xe3b   : > { %v6099_v0 = vpop.permute.xlu0 %6098 }
 0xe3c   : > { %v6102_v24 = vpop.permute.xlu1 %6101  ;;  %v6124_v47 = vrot.slane %v6099_v0, %v8421_v6 }
 0xe3d   : > { %v6128_v3 = vrot.slane %v6102_v24, %v8421_v6 }
 0xe3f   : > { %v6153_v10 = vsel %vm6006_vm8, %v6128_v3, %v6124_v47 }
 0xe40   : > { %v6105_v56 = vpop.permute.xlu1 %6104 }
 0xe41   : > { %v6132_v4 = vrot.slane %v6105_v56, %v8421_v6 }
 0xe43   : > { %v6154_v40 = vsel %vm6008_vm9, %v6132_v4, %v6153_v10 }
 0xe44   : > { %v6108_v58 = vpop.permute.xlu1 %6107 }
 0xe45   : > { %v6136_v5 = vrot.slane %v6108_v58, %v8421_v6 }
 0xe47   : > { %v6155_v26 = vsel %vm6010_vm10, %v6136_v5, %v6154_v40 }
 0xe48   : > { %v6111_v62 = vpop.permute.xlu1 %6110 }
 0xe49   : > { %v6140_v39 = vrot.slane %v6111_v62, %v8421_v6 }
 0xe4b   : > { %v6156_v12 = vsel %vm6012_vm11, %v6140_v39, %v6155_v26 }
 0xe4c   : > { %v6114_v2 = vpop.permute.xlu1 %6113 }
 0xe4d   : > { %v6144_v49 = vrot.slane %v6114_v2, %v8421_v6 }
 0xe4f   : > { %v6157_v21 = vsel %vm6014_vm12, %v6144_v49, %v6156_v12 }
 0xe50   : > { %v6117_v7 = vpop.permute.xlu1 %6116 }
 0xe51   : > { %v6148_v50 = vrot.slane %v6117_v7, %v8421_v6 }
 0xe53   : > { %v6158_v53 = vsel %vm6016_vm13, %v6148_v50, %v6157_v21 }
 0xe54   : > { %v6120_v25 = vpop.permute.xlu1 %6119 }
 0xe55   : > { %v6152_v22 = vrot.slane %v6120_v25, %v8421_v6 }
 0xe57   : > { %v6159_v55 = vsel %vm6018_vm14, %v6152_v22, %v6158_v53 }
 0xe58   : > { %v6161_v60 = vsel %vm379_vm2, %v6159_v55, 0.0 }
 0xe59   : > { %6162 = vadd.xlane.f32.xlu1 %v6161_v60 }
 0xee6   : > { %v6163_v63 = vpop.xlane.xlu1 %6162 }
 0xee7   : > { %7323 = vrcp.f32 %v6163_v63 }
 0xef1   : > { %v7324_v1 = vpop.eup %7323 }
 0xef2   : > { %v6169_v31 = vrot.slane %v7324_v1, %v6027_v11  ;;  %v6173_v9 = vrot.slane %v7324_v1, %v6031_v13  ;;  %v6177_v6 = vrot.slane %v7324_v1, %v6035_v38  ;;  %v6181_v54 = vrot.slane %v7324_v1, %v6039_v23 }
 0xef3   : > { %v6185_v29 = vrot.slane %v7324_v1, %v6043_v27  ;;  %v6189_v13 = vrot.slane %v7324_v1, %v6047_v57  ;;  %v6193_v38 = vrot.slane %v7324_v1, %v6051_v59  ;;  %v6197_v23 = vrot.slane %v7324_v1, %v6055_v36 }
 0xef4   : > { %v6206_v34 = vmul.f32 %v7308_v33, %v6169_v31  ;;  %v6207_v44 = vmul.f32 %v7310_v61, %v6173_v9  ;;  %v6208_v45 = vmul.f32 %v7312_v51, %v6177_v6  ;;  %v6209_v41 = vmul.f32 %v7314_v18, %v6181_v54 }
 0xef5   : > { %v6210_v11 = vmul.f32 %v7316_v32, %v6185_v29  ;;  %v6211_v33 = vmul.f32 %v7318_v35, %v6189_v13  ;;  %v6212_v61 = vmul.f32 %v7320_v48, %v6193_v38  ;;  %v6213_v8 = vmul.f32 %v7322_v14, %v6197_v23 }
 0xef6   : > { %6216 = vperm.xlu0 %7161, %v6206_v34  }
 0xefa   : > { %6221 = vperm.xlu0 %7161, %v6207_v44  }
 0xefe   : > { %6226 = vperm.xlu0 %7161, %v6208_v45  }
 0xf02   : > { %6231 = vperm.xlu0 %7161, %v6209_v41  }
 0xf06   : > { %6236 = vperm.xlu0 %7161, %v6210_v11  }
 0xf0a   : > { %6241 = vperm.xlu0 %7161, %v6211_v33  }
 0xf0e   : > { %6246 = vperm.xlu0 %7161, %v6212_v61  }
 0xf12   : > { %6251 = vperm.xlu0 %7161, %v6213_v8  }
 0xf75   : > { %v6217_v51 = vpop.permute.xlu0 %6216 }
 0xf76   : > { %v6254_v18 = vmul.f32 %v6217_v51, %v8375_v16 }
 0xf78   : > { %v6262_v48 = vrot.slane %v6254_v18, 4 }
 0xf79   : > { %v6222_v27 = vpop.permute.xlu0 %6221 }
 0xf7a   : > { %v6255_v42 = vmul.f32 %v6222_v27, %v8382_v17  ;;  %v6263_v58 = vadd.f32 %v6262_v48, %v6254_v18 }
 0xf7c   : > { %v6268_v32 = vrot.slane %v6255_v42, 4  ;;  %v6264_v47 = vrot.slane %v6263_v58, 2 }
 0xf7d   : > { %v6227_v52 = vpop.permute.xlu0 %6226 }
 0xf7e   : > { %v6256_v57 = vmul.f32 %v6227_v52, %v8380_v43  ;;  %v6269_v24 = vadd.f32 %v6268_v32, %v6255_v42  ;;  %v6265_v40 = vadd.f32 %v6264_v47, %v6263_v58 }
 0xf80   : > { %v6274_v35 = vrot.slane %v6256_v57, 4  ;;  %v6270_v2 = vrot.slane %v6269_v24, 2  ;;  %v6266_v63 = vrot.slane %v6265_v40, 1 }
 0xf81   : > { %v6232_v30 = vpop.permute.xlu0 %6231 }
 0xf82   : > { %v6257_v59 = vmul.f32 %v6232_v30, %v8390_v19  ;;  %v6275_v56 = vadd.f32 %v6274_v35, %v6256_v57  ;;  %v6271_v7 = vadd.f32 %v6270_v2, %v6269_v24  ;;  %v6267_v41 = vadd.f32 %v6266_v63, %v6265_v40 }
 0xf84   : > { %v6280_v28 = vrot.slane %v6257_v59, 4  ;;  %v6276_v3 = vrot.slane %v6275_v56, 2 }
 0xf85   : > { %v6237_v36 = vpop.permute.xlu0 %6236 }
 0xf86   : > { %v6258_v14 = vmul.f32 %v6237_v36, %v8388_v15  ;;  %v6281_v62 = vadd.f32 %v6280_v28, %v6257_v59  ;;  %v6277_v49 = vadd.f32 %v6276_v3, %v6275_v56 }
 0xf88   : > { %v6286_v0 = vrot.slane %v6258_v14, 4  ;;  %v6282_v4 = vrot.slane %v6281_v62, 2  ;;  %v6278_v60 = vrot.slane %v6277_v49, 1 }
 0xf89   : > { %v6242_v17 = vpop.permute.xlu0 %6241 }
 0xf8a   : > { %v6287_v43 = vadd.f32 %v6286_v0, %v6258_v14  ;;  %v6259_v16 = vmul.f32 %v6242_v17, %v8397_v46  ;;  %v6283_v50 = vadd.f32 %v6282_v4, %v6281_v62  ;;  %v6272_v46 = vrot.slane %v6271_v7, 1 }
 0xf8b   : > { %v6279_v54 = vadd.f32 %v6278_v60, %v6277_v49 }
 0xf8c   : > { %v6292_v19 = vrot.slane %v6259_v16, 4  ;;  %v6288_v5 = vrot.slane %v6287_v43, 2  ;;  %v6284_v1 = vrot.slane %v6283_v50, 1  ;;  %v6273_v9 = vadd.f32 %v6272_v46, %v6271_v7 }
 0xf8d   : > { %v6247_v39 = vpop.permute.xlu0 %6246 }
 0xf8e   : > { %v6293_v10 = vadd.f32 %v6292_v19, %v6259_v16  ;;  %v6260_v15 = vmul.f32 %v6247_v39, %v8395_v37  ;;  %v6289_v25 = vadd.f32 %v6288_v5, %v6287_v43  ;;  %v6285_v29 = vadd.f32 %v6284_v1, %v6283_v50 }
 0xf8f   : > { %v6318_v33 = vsel %vm6006_vm8, %v6273_v9, %v6267_v41 }
 0xf90   : > { %v6294_v26 = vrot.slane %v6293_v10, 2  ;;  %v6298_v12 = vrot.slane %v6260_v15, 4  ;;  %v6290_v37 = vrot.slane %v6289_v25, 1  ;;  %v6319_v23 = vsel %vm6008_vm9, %v6279_v54, %v6318_v33 }
 0xf91   : > { %v6252_v21 = vpop.permute.xlu0 %6251  ;;  %v6320_v51 = vsel %vm6010_vm10, %v6285_v29, %v6319_v23 }
 0xf92   : > { %v6295_v22 = vadd.f32 %v6294_v26, %v6293_v10  ;;  %v6299_v53 = vadd.f32 %v6298_v12, %v6260_v15  ;;  %v6261_v55 = vmul.f32 %v6252_v21, %v8401_v20  ;;  %v6291_v20 = vadd.f32 %v6290_v37, %v6289_v25 }
 0xf94   : > { %v6300_v31 = vrot.slane %v6299_v53, 2  ;;  %v6304_v34 = vrot.slane %v6261_v55, 4  ;;  %v6296_v44 = vrot.slane %v6295_v22, 1  ;;  %v6321_v52 = vsel %vm6012_vm11, %v6291_v20, %v6320_v51 }
 0xf96   : > { %v6301_v6 = vadd.f32 %v6300_v31, %v6299_v53  ;;  %v6305_v45 = vadd.f32 %v6304_v34, %v6261_v55  ;;  %v6297_v38 = vadd.f32 %v6296_v44, %v6295_v22 }
 0xf98   : > { %v6302_v11 = vrot.slane %v6301_v6, 1  ;;  %v6306_v13 = vrot.slane %v6305_v45, 2  ;;  %v6322_v57 = vsel %vm6014_vm12, %v6297_v38, %v6321_v52 }
 0xf9a   : > { %v6307_v61 = vadd.f32 %v6306_v13, %v6305_v45  ;;  %v6303_v8 = vadd.f32 %v6302_v11, %v6301_v6 }
 0xf9c   : > { %v6308_v27 = vrot.slane %v6307_v61, 1  ;;  %v6323_v18 = vsel %vm6016_vm13, %v6303_v8, %v6322_v57 }
 0xf9e   : > { %v6309_v42 = vadd.f32 %v6308_v27, %v6307_v61 }
 0xfa0   : > { %v6324_v30 = vsel %vm6018_vm14, %v6309_v42, %v6323_v18 }
 0xfa1   : > { %6326 = vst [vmem:[%s218_s7] sm:$0xff] %v6324_v30 }
 0xfa2   : > { %7338 = shalt.err (!%p7335_p3)
}
 0xfa3   : > { %s7339_s16 = scalar_lea.hbm %s8516_s11, 128  ;;  %s7343_s25 = scalar_lea.hbm %s8566_s5, 256 }
 0xfa4   : > { %p7340_p4 = scmp.ne.s32.totalorder %s8516_s11, %s7339_s16  ;;  %p7344_p9 = scmp.lt.u32.totalorder %s8516_s11, %s8566_s5 }
 0xfa5   : > { %p7345_p10 = scmp.lt.u32.totalorder %s7343_s25, %s7339_s16  ;;  %p7347_p12 = scmp.lt.u32.totalorder %s7339_s16, %s8516_s11 }
 0xfa6   : > { %p7341_p7 = pnand %p7340_p4, %p7475_p5 }
 0xfa7   : > { %p7346_p11 = por %p7345_p10, %p7344_p9 }
 0xfa8   : > { %p7342_p8 = pneg %p7341_p7 }
 0xfa9   : > { %p7348_p13 = por %p7347_p12, %p7346_p11 }
 0xfab   : > { %p7349_p0 = pnand %p7348_p13, %p7342_p8 }
 0xfad   : > { %7352 = shalt.err (!%p7349_p0)
}
 0xfae   : > { %7105 = dma.vmem_to_hbm [thread:$0]  (%p7475_p5), %s8518_s8, 128, %s8516_s11, %s6328_s22  }
 0xfaf PF: > { %p7111_p1 = scmp.ge.s32.totalorder %s7387_s21, 2  ;;  %s6353_s6 = sand.u32 1, %s7375_s18  }
 0xfb0   : > { %s6354_s7 = scalar_lea.sflag [#allocation4], %s6353_s6 }
 0xfb1   : > { %p7108_p2 = pnand %p7111_p1, %p7479_p6 }
 0xfb3   : > { %7370 = dma.done.wait (!%p7108_p2), %s6354_s7, 128  }
 0xfb4   : > { %7372 = vsyncadd (!%p7108_p2), %s6354_s7, 4294967168  ;;  %p15_p3 = scmp.ge.s32.totalorder %s7462_s24, 4   ;;  %s8569_s18 = smov %s7379_s19 }
 0xfb5   : > { %s8570_s19 = smov %s7383_s20  ;;  %s8571_s20 = smov %s7473_s27 }
 0xfb6   : > { %s8572_s21 = smov %s7462_s24  ;;  %17 = sbr.rel (!%p15_p3) target bundleno = 3 (0x3), region = 75 }
 0xfbd   :  { %6359 = vsyncpa [#allocation4], 1 }
 0xfbe   :  { %6361 = vsyncpa [#allocation4 + $0x1], 1 }

</bundles_post_ra>
